<compile_context>
chip_gen: v7x
topology: tpu7x:2x2x1
jax: 0.10.0
libtpu: 0.0.40
codegen_flags: <defaults>
</compile_context>

<pallas_src>
import jax
import jax.numpy as jnp
import numpy as np
from jax.experimental import pallas as pl
from jax.experimental.pallas import tpu as pltpu

_LANE = 128


def _round_up(n, m):
    return (n + m - 1) // m * m


def _pad2(a, rows, cols):
    return jnp.pad(a, ((0, rows - a.shape[0]), (0, cols - a.shape[1])))


def _make_kernel(block_b, d, k, n_g_rest, compute_dtype):
    def kernel(x_ref, ew1_ref, ew2_ref, b0_ref, *rest):
        # rest = [g_w1, g_b1, ..., f1w, f1b, f2w, f2b, f3w, f3b, out_ref]
        g_params = rest[: 2 * n_g_rest]
        (f1w_ref, f1b_ref, f2w_ref, f2b_ref, f3w_ref, f3b_ref) = rest[
            2 * n_g_rest: 2 * n_g_rest + 6]
        out_ref = rest[2 * n_g_rest + 6]

        x = x_ref[...].reshape(block_b * d, k)  # (block_b*d, k)

        # Hoisted first g layer (pre-activation), split over the two concat halves.
        a = jnp.dot(x, ew1_ref[...], preferred_element_type=jnp.float32)  # row (b, j)
        c = jnp.dot(x, ew2_ref[...], preferred_element_type=jnp.float32)  # row (b, i)
        g0 = a.shape[-1]
        h = (a.reshape(block_b, 1, d, g0)
             + c.reshape(block_b, d, 1, g0)
             + b0_ref[...].astype(jnp.float32))       # (block_b, d, d, g0), [b, i, j, :]
        h = jnp.maximum(h, 0.0).reshape(block_b * d * d, g0)

        # Remaining g layers on the full pair slab.
        for li in range(n_g_rest):
            w = g_params[2 * li][...]
            bias = g_params[2 * li + 1][...]
            h = jnp.dot(h.astype(compute_dtype), w, preferred_element_type=jnp.float32)
            h = jnp.maximum(h + bias.astype(jnp.float32), 0.0)

        # Sum over the d*d pairs -> (block_b, g_last) in f32.
        g = h.reshape(block_b, d * d, h.shape[-1]).sum(axis=1)

        # f network (dropout = eval-mode identity).
        f = jnp.dot(g.astype(compute_dtype), f1w_ref[...],
                    preferred_element_type=jnp.float32)
        f = jnp.maximum(f + f1b_ref[...].astype(jnp.float32), 0.0)
        f = jnp.dot(f.astype(compute_dtype), f2w_ref[...],
                    preferred_element_type=jnp.float32)
        f = jnp.maximum(f + f2b_ref[...].astype(jnp.float32), 0.0)
        f = jnp.dot(f.astype(compute_dtype), f3w_ref[...],
                    preferred_element_type=jnp.float32)
        f = f + f3b_ref[...].astype(jnp.float32)

        out_ref[...] = f.astype(out_ref.dtype)

    return kernel


def relational_forward(x, params, g_sizes, out_size, *, block_b=8,
                       compute_dtype=jnp.float32):
    b, d, k = x.shape
    out_dtype = x.dtype
    f32 = jnp.float32

    ew = params["ew"].astype(f32)   # (2k, k)
    eb = params["eb"].astype(f32)   # (1, k)
    g_layers = [(w.astype(f32), bb.astype(f32)) for (w, bb) in params["g"]]
    f1w, f1b = params["f1w"].astype(f32), params["f1b"].astype(f32)
    f2w, f2b = params["f2w"].astype(f32), params["f2b"].astype(f32)
    f3w, f3b = params["f3w"].astype(f32), params["f3b"].astype(f32)

    # Lane-pad every hidden/output width to a multiple of 128 (exact; zeros propagate).
    g_pad = [_round_up(gs, _LANE) for gs in g_sizes]
    f1_p = _round_up(f1w.shape[1], _LANE)
    f2_p = _round_up(f2w.shape[1], _LANE)
    out_p = _round_up(out_size, _LANE)

    # Hoist the first g layer through edge_feature + pair broadcast (tiny weight matmuls).
    w0, b0 = g_layers[0]
    w0p = _pad2(w0, k, g_pad[0])
    ew1 = ew[:k] @ w0p                       # multiplies x[j] (first half of concat)
    ew2 = ew[k:] @ w0p                       # multiplies x[i] (second half of concat)
    b0p = eb @ w0p + _pad2(b0, 1, g_pad[0])

    flat = [ew1, ew2, b0p]
    prev = g_pad[0]
    for li in range(1, len(g_layers)):
        w, bb = g_layers[li]
        flat += [_pad2(w, prev, g_pad[li]), _pad2(bb, 1, g_pad[li])]
        prev = g_pad[li]
    flat += [_pad2(f1w, prev, f1_p), _pad2(f1b, 1, f1_p),
             _pad2(f2w, f1_p, f2_p), _pad2(f2b, 1, f2_p),
             _pad2(f3w, f2_p, out_p), _pad2(f3b, 1, out_p)]
    flat = [p.astype(compute_dtype) for p in flat]

    # Batch padding to a multiple of block_b (masked final block avoided by padding).
    b_pad = _round_up(b, block_b)
    x_p = jnp.pad(x, ((0, b_pad - b), (0, 0), (0, 0))).astype(compute_dtype)
    n_blocks = b_pad // block_b

    in_specs = [pl.BlockSpec((block_b, d, k), lambda i: (i, 0, 0))]
    in_specs += [pl.BlockSpec(p.shape, lambda i: (0, 0)) for p in flat]
    out_spec = pl.BlockSpec((block_b, out_p), lambda i: (i, 0))

    # Advisory cost estimate for XLA scheduling.
    itemsize = jnp.dtype(compute_dtype).itemsize
    flops = 4 * b_pad * d * k * g_pad[0]                 # two hoisted matmuls
    m_pairs = b_pad * d * d
    pv = g_pad[0]
    for gp in g_pad[1:]:
        flops += 2 * m_pairs * pv * gp
        pv = gp
    flops += 2 * b_pad * (pv * f1_p + f1_p * f2_p + f2_p * out_p)
    bytes_accessed = ((int(x_p.size) + sum(int(p.size) for p in flat)) * itemsize
                      + b_pad * out_p * jnp.dtype(out_dtype).itemsize)

    kernel = _make_kernel(block_b, d, k, len(g_layers) - 1, compute_dtype)

    out_padded = pl.pallas_call(
        kernel,
        out_shape=jax.ShapeDtypeStruct((b_pad, out_p), out_dtype),
        grid_spec=pltpu.PrefetchScalarGridSpec(
            num_scalar_prefetch=0,
            grid=(n_blocks,),
            in_specs=in_specs,
            out_specs=out_spec,
        ),
        compiler_params=pltpu.CompilerParams(
            dimension_semantics=("parallel",),
            vmem_limit_bytes=32 * 1024 * 1024,
        ),
        cost_estimate=pl.CostEstimate(
            flops=int(flops), transcendentals=0, bytes_accessed=int(bytes_accessed)),
    )(x_p, *flat)

    return out_padded[:b, :out_size]


def reference_forward(x, params):
    """Pure-JAX reference matching the PyTorch forward (eval mode)."""
    b, d, k = x.shape
    x_i = jnp.broadcast_to(x[:, None, :, :], (b, d, d, k))   # [b, i, j, :] = x[b, j]
    x_j = jnp.broadcast_to(x[:, :, None, :], (b, d, d, k))   # [b, i, j, :] = x[b, i]
    x_full = jnp.concatenate([x_i, x_j], axis=3)              # (b, d, d, 2k)
    h = x_full @ params["ew"] + params["eb"]                   # edge_feature
    h = h.reshape(b * d * d, -1)
    for w, bias in params["g"]:
        h = jnp.maximum(h @ w + bias, 0.0)
    g = h.reshape(b, d * d, -1).sum(axis=1)
    f = jnp.maximum(g @ params["f1w"] + params["f1b"], 0.0)
    f = f @ params["f2w"] + params["f2b"]
    f = jnp.maximum(f, 0.0)                                    # dropout = identity (eval)
    f = f @ params["f3w"] + params["f3b"]
    return f


def init_params(key, in_size, g_sizes, f_fc1, f_fc2, out_size):
    """Deterministic synthetic weights (Linear stored as (in, out) + (1, out) bias)."""
    keys = jax.random.split(key, 32)
    ki = iter(range(32))

    def lin(in_s, out_s):
        w = 0.05 * jax.random.normal(keys[next(ki)], (in_s, out_s), jnp.float32)
        b = 0.05 * jax.random.normal(keys[next(ki)], (1, out_s), jnp.float32)
        return w, b

    ew, eb = lin(in_size // 2 * 4, in_size)   # edge_feature: Linear(2*in_size, in_size)
    g = []
    prev = in_size
    for gs in g_sizes:
        g.append(lin(prev, gs))
        prev = gs
    f1w, f1b = lin(g_sizes[-1], f_fc1)
    f2w, f2b = lin(f_fc1, f_fc2)
    f3w, f3b = lin(f_fc2, out_size)
    return {"ew": ew, "eb": eb, "g": g,
            "f1w": f1w, "f1b": f1b, "f2w": f2w, "f2b": f2b, "f3w": f3w, "f3b": f3b}


if __name__ == "__main__":
    # Small shapes consistent with the module's forward: x is (b, d, k), k == in_size.
    b, d, k = 20, 8, 32
    in_size = k
    out_size = 16
    hyp = {"g_layers": [64, 64], "f_fc1": 64, "f_fc2": 64, "dropout": 0.1}

    key = jax.random.PRNGKey(0)
    kx, kp = jax.random.split(key)
    x = jax.random.normal(kx, (b, d, k), jnp.float32)
    params = init_params(kp, in_size, hyp["g_layers"], hyp["f_fc1"], hyp["f_fc2"], out_size)

    ref = reference_forward(x, params)

    # f32 path (tight check; also the v5e-friendly configuration).
    out_f32 = relational_forward(x, params, hyp["g_layers"], out_size,
                                 block_b=8, compute_dtype=jnp.float32)
    out_f32 = jax.block_until_ready(out_f32)
    np.testing.assert_allclose(np.asarray(out_f32), np.asarray(ref), rtol=5e-4, atol=5e-4)

    # bf16 MXU operands / f32 accumulation (v6e / v7x); loose tolerance.
    out_bf16 = relational_forward(x, params, hyp["g_layers"], out_size,
                                  block_b=8, compute_dtype=jnp.bfloat16)
    out_bf16 = jax.block_until_ready(out_bf16)
    np.testing.assert_allclose(np.asarray(out_bf16), np.asarray(ref), rtol=1.5e-1, atol=1e-1)

    print("KERNEL_OK")
</pallas_src>

<mosaic_0001>
module attributes {stable_mosaic.version = 11 : i64} {
  func.func @kernel(%arg0: i32, %arg1: memref<8x8x32xf32, #tpu.memory_space<vmem>>, %arg2: memref<32x128xf32, #tpu.memory_space<vmem>>, %arg3: memref<32x128xf32, #tpu.memory_space<vmem>>, %arg4: memref<1x128xf32, #tpu.memory_space<vmem>>, %arg5: memref<128x128xf32, #tpu.memory_space<vmem>>, %arg6: memref<1x128xf32, #tpu.memory_space<vmem>>, %arg7: memref<128x128xf32, #tpu.memory_space<vmem>>, %arg8: memref<1x128xf32, #tpu.memory_space<vmem>>, %arg9: memref<128x128xf32, #tpu.memory_space<vmem>>, %arg10: memref<1x128xf32, #tpu.memory_space<vmem>>, %arg11: memref<128x128xf32, #tpu.memory_space<vmem>>, %arg12: memref<1x128xf32, #tpu.memory_space<vmem>>, %arg13: memref<8x128xf32, #tpu.memory_space<vmem>>) attributes {dimension_semantics = [#tpu.dimension_semantics<parallel>], iteration_bounds = array<i64: 3>, scalar_prefetch = 0 : i64, scratch_operands = 0 : i64, tpu.core_type = #tpu.core_type<tc>, window_params = [{transform_indices = @transform_0, window_bounds = array<i64: 8, 8, 32>}, {pipeline_mode = #tpu.pipeline_mode<synchronous>, transform_indices = @transform_1, window_bounds = array<i64: 32, 128>}, {pipeline_mode = #tpu.pipeline_mode<synchronous>, transform_indices = @transform_2, window_bounds = array<i64: 32, 128>}, {pipeline_mode = #tpu.pipeline_mode<synchronous>, transform_indices = @transform_3, window_bounds = array<i64: 1, 128>}, {pipeline_mode = #tpu.pipeline_mode<synchronous>, transform_indices = @transform_4, window_bounds = array<i64: 128, 128>}, {pipeline_mode = #tpu.pipeline_mode<synchronous>, transform_indices = @transform_5, window_bounds = array<i64: 1, 128>}, {pipeline_mode = #tpu.pipeline_mode<synchronous>, transform_indices = @transform_6, window_bounds = array<i64: 128, 128>}, {pipeline_mode = #tpu.pipeline_mode<synchronous>, transform_indices = @transform_7, window_bounds = array<i64: 1, 128>}, {pipeline_mode = #tpu.pipeline_mode<synchronous>, transform_indices = @transform_8, window_bounds = array<i64: 128, 128>}, {pipeline_mode = #tpu.pipeline_mode<synchronous>, transform_indices = @transform_9, window_bounds = array<i64: 1, 128>}, {pipeline_mode = #tpu.pipeline_mode<synchronous>, transform_indices = @transform_10, window_bounds = array<i64: 128, 128>}, {pipeline_mode = #tpu.pipeline_mode<synchronous>, transform_indices = @transform_11, window_bounds = array<i64: 1, 128>}, {transform_indices = @transform_12, window_bounds = array<i64: 8, 128>}]} {
    %c0 = arith.constant 0 : index
    %c0_0 = arith.constant 0 : index
    %c0_1 = arith.constant 0 : index
    %0 = vector.load %arg1[%c0, %c0_0, %c0_1] : memref<8x8x32xf32, #tpu.memory_space<vmem>>, vector<8x8x32xf32>
    %1 = vector.shape_cast %0 : vector<8x8x32xf32> to vector<64x32xf32>
    %c0_2 = arith.constant 0 : index
    %c0_3 = arith.constant 0 : index
    %2 = vector.load %arg2[%c0_2, %c0_3] : memref<32x128xf32, #tpu.memory_space<vmem>>, vector<32x128xf32>
    %cst = arith.constant dense<0.000000e+00> : vector<64x128xf32>
    %3 = tpu.matmul %1, %2, %cst {dimension_numbers = #tpu.dot_dimension_numbers<[1], [0], [0], [1], [0, 0, 1, 1], [], []>} : vector<64x32xf32>, vector<32x128xf32>, vector<64x128xf32> -> vector<64x128xf32>
    %c0_4 = arith.constant 0 : index
    %c0_5 = arith.constant 0 : index
    %4 = vector.load %arg3[%c0_4, %c0_5] : memref<32x128xf32, #tpu.memory_space<vmem>>, vector<32x128xf32>
    %cst_6 = arith.constant dense<0.000000e+00> : vector<64x128xf32>
    %5 = tpu.matmul %1, %4, %cst_6 {dimension_numbers = #tpu.dot_dimension_numbers<[1], [0], [0], [1], [0, 0, 1, 1], [], []>} : vector<64x32xf32>, vector<32x128xf32>, vector<64x128xf32> -> vector<64x128xf32>
    %6 = vector.shape_cast %3 : vector<64x128xf32> to vector<8x1x8x128xf32>
    %7 = vector.shape_cast %5 : vector<64x128xf32> to vector<8x8x1x128xf32>
    %8 = vector.broadcast %6 : vector<8x1x8x128xf32> to vector<8x8x8x128xf32>
    %9 = vector.broadcast %7 : vector<8x8x1x128xf32> to vector<8x8x8x128xf32>
    %10 = arith.addf %8, %9 : vector<8x8x8x128xf32>
    %c0_7 = arith.constant 0 : index
    %c0_8 = arith.constant 0 : index
    %11 = vector.load %arg4[%c0_7, %c0_8] : memref<1x128xf32, #tpu.memory_space<vmem>>, vector<1x128xf32>
    %12 = vector.shape_cast %11 : vector<1x128xf32> to vector<1x1x1x128xf32>
    %13 = vector.broadcast %12 : vector<1x1x1x128xf32> to vector<8x8x8x128xf32>
    %14 = arith.addf %10, %13 : vector<8x8x8x128xf32>
    %cst_9 = arith.constant 0.000000e+00 : f32
    %15 = vector.broadcast %cst_9 : f32 to vector<8x8x8x128xf32>
    %16 = arith.maximumf %14, %15 : vector<8x8x8x128xf32>
    %17 = vector.shape_cast %16 : vector<8x8x8x128xf32> to vector<512x128xf32>
    %c0_10 = arith.constant 0 : index
    %c0_11 = arith.constant 0 : index
    %18 = vector.load %arg5[%c0_10, %c0_11] : memref<128x128xf32, #tpu.memory_space<vmem>>, vector<128x128xf32>
    %c0_12 = arith.constant 0 : index
    %c0_13 = arith.constant 0 : index
    %19 = vector.load %arg6[%c0_12, %c0_13] : memref<1x128xf32, #tpu.memory_space<vmem>>, vector<1x128xf32>
    %cst_14 = arith.constant dense<0.000000e+00> : vector<512x128xf32>
    %20 = tpu.matmul %17, %18, %cst_14 {dimension_numbers = #tpu.dot_dimension_numbers<[1], [0], [0], [1], [0, 0, 1, 1], [], []>} : vector<512x128xf32>, vector<128x128xf32>, vector<512x128xf32> -> vector<512x128xf32>
    %21 = vector.broadcast %19 : vector<1x128xf32> to vector<512x128xf32>
    %22 = arith.addf %20, %21 : vector<512x128xf32>
    %cst_15 = arith.constant 0.000000e+00 : f32
    %23 = vector.broadcast %cst_15 : f32 to vector<512x128xf32>
    %24 = arith.maximumf %22, %23 : vector<512x128xf32>
    %25 = vector.shape_cast %24 : vector<512x128xf32> to vector<8x64x128xf32>
    %cst_16 = arith.constant dense<0.000000e+00> : vector<8x128xf32>
    %26 = vector.multi_reduction <add>, %25, %cst_16 [1] : vector<8x64x128xf32> to vector<8x128xf32>
    %c0_17 = arith.constant 0 : index
    %c0_18 = arith.constant 0 : index
    %27 = vector.load %arg7[%c0_17, %c0_18] : memref<128x128xf32, #tpu.memory_space<vmem>>, vector<128x128xf32>
    %cst_19 = arith.constant dense<0.000000e+00> : vector<8x128xf32>
    %28 = tpu.matmul %26, %27, %cst_19 {dimension_numbers = #tpu.dot_dimension_numbers<[1], [0], [0], [1], [0, 0, 1, 1], [], []>} : vector<8x128xf32>, vector<128x128xf32>, vector<8x128xf32> -> vector<8x128xf32>
    %c0_20 = arith.constant 0 : index
    %c0_21 = arith.constant 0 : index
    %29 = vector.load %arg8[%c0_20, %c0_21] : memref<1x128xf32, #tpu.memory_space<vmem>>, vector<1x128xf32>
    %30 = vector.broadcast %29 : vector<1x128xf32> to vector<8x128xf32>
    %31 = arith.addf %28, %30 : vector<8x128xf32>
    %cst_22 = arith.constant 0.000000e+00 : f32
    %32 = vector.broadcast %cst_22 : f32 to vector<8x128xf32>
    %33 = arith.maximumf %31, %32 : vector<8x128xf32>
    %c0_23 = arith.constant 0 : index
    %c0_24 = arith.constant 0 : index
    %34 = vector.load %arg9[%c0_23, %c0_24] : memref<128x128xf32, #tpu.memory_space<vmem>>, vector<128x128xf32>
    %cst_25 = arith.constant dense<0.000000e+00> : vector<8x128xf32>
    %35 = tpu.matmul %33, %34, %cst_25 {dimension_numbers = #tpu.dot_dimension_numbers<[1], [0], [0], [1], [0, 0, 1, 1], [], []>} : vector<8x128xf32>, vector<128x128xf32>, vector<8x128xf32> -> vector<8x128xf32>
    %c0_26 = arith.constant 0 : index
    %c0_27 = arith.constant 0 : index
    %36 = vector.load %arg10[%c0_26, %c0_27] : memref<1x128xf32, #tpu.memory_space<vmem>>, vector<1x128xf32>
    %37 = vector.broadcast %36 : vector<1x128xf32> to vector<8x128xf32>
    %38 = arith.addf %35, %37 : vector<8x128xf32>
    %cst_28 = arith.constant 0.000000e+00 : f32
    %39 = vector.broadcast %cst_28 : f32 to vector<8x128xf32>
    %40 = arith.maximumf %38, %39 : vector<8x128xf32>
    %c0_29 = arith.constant 0 : index
    %c0_30 = arith.constant 0 : index
    %41 = vector.load %arg11[%c0_29, %c0_30] : memref<128x128xf32, #tpu.memory_space<vmem>>, vector<128x128xf32>
    %cst_31 = arith.constant dense<0.000000e+00> : vector<8x128xf32>
    %42 = tpu.matmul %40, %41, %cst_31 {dimension_numbers = #tpu.dot_dimension_numbers<[1], [0], [0], [1], [0, 0, 1, 1], [], []>} : vector<8x128xf32>, vector<128x128xf32>, vector<8x128xf32> -> vector<8x128xf32>
    %c0_32 = arith.constant 0 : index
    %c0_33 = arith.constant 0 : index
    %43 = vector.load %arg12[%c0_32, %c0_33] : memref<1x128xf32, #tpu.memory_space<vmem>>, vector<1x128xf32>
    %44 = vector.broadcast %43 : vector<1x128xf32> to vector<8x128xf32>
    %45 = arith.addf %42, %44 : vector<8x128xf32>
    %c0_34 = arith.constant 0 : index
    %c0_35 = arith.constant 0 : index
    %46 = vector.load %arg13[%c0_34, %c0_35] : memref<8x128xf32, #tpu.memory_space<vmem>>, vector<8x128xf32>
    tpu.vector_store %arg13[%c0_34, %c0_35], %45 {strides = array<i32>} : memref<8x128xf32, #tpu.memory_space<vmem>>, vector<8x128xf32>,
    return
  }
  func.func @transform_0(%arg0: i32) -> (i32, i32, i32) {
    %c0_i32 = arith.constant 0 : i32
    %c0_i32_0 = arith.constant 0 : i32
    %c0_i32_1 = arith.constant 0 : i32
    return %arg0, %c0_i32, %c0_i32_0 : i32, i32, i32
  }
  func.func @transform_1(%arg0: i32) -> (i32, i32) {
    %c0_i32 = arith.constant 0 : i32
    %c0_i32_0 = arith.constant 0 : i32
    %c0_i32_1 = arith.constant 0 : i32
    return %c0_i32, %c0_i32_0 : i32, i32
  }
  func.func @transform_2(%arg0: i32) -> (i32, i32) {
    %c0_i32 = arith.constant 0 : i32
    %c0_i32_0 = arith.constant 0 : i32
    %c0_i32_1 = arith.constant 0 : i32
    return %c0_i32, %c0_i32_0 : i32, i32
  }
  func.func @transform_3(%arg0: i32) -> (i32, i32) {
    %c0_i32 = arith.constant 0 : i32
    %c0_i32_0 = arith.constant 0 : i32
    %c0_i32_1 = arith.constant 0 : i32
    return %c0_i32, %c0_i32_0 : i32, i32
  }
  func.func @transform_4(%arg0: i32) -> (i32, i32) {
    %c0_i32 = arith.constant 0 : i32
    %c0_i32_0 = arith.constant 0 : i32
    %c0_i32_1 = arith.constant 0 : i32
    return %c0_i32, %c0_i32_0 : i32, i32
  }
  func.func @transform_5(%arg0: i32) -> (i32, i32) {
    %c0_i32 = arith.constant 0 : i32
    %c0_i32_0 = arith.constant 0 : i32
    %c0_i32_1 = arith.constant 0 : i32
    return %c0_i32, %c0_i32_0 : i32, i32
  }
  func.func @transform_6(%arg0: i32) -> (i32, i32) {
    %c0_i32 = arith.constant 0 : i32
    %c0_i32_0 = arith.constant 0 : i32
    %c0_i32_1 = arith.constant 0 : i32
    return %c0_i32, %c0_i32_0 : i32, i32
  }
  func.func @transform_7(%arg0: i32) -> (i32, i32) {
    %c0_i32 = arith.constant 0 : i32
    %c0_i32_0 = arith.constant 0 : i32
    %c0_i32_1 = arith.constant 0 : i32
    return %c0_i32, %c0_i32_0 : i32, i32
  }
  func.func @transform_8(%arg0: i32) -> (i32, i32) {
    %c0_i32 = arith.constant 0 : i32
    %c0_i32_0 = arith.constant 0 : i32
    %c0_i32_1 = arith.constant 0 : i32
    return %c0_i32, %c0_i32_0 : i32, i32
  }
  func.func @transform_9(%arg0: i32) -> (i32, i32) {
    %c0_i32 = arith.constant 0 : i32
    %c0_i32_0 = arith.constant 0 : i32
    %c0_i32_1 = arith.constant 0 : i32
    return %c0_i32, %c0_i32_0 : i32, i32
  }
  func.func @transform_10(%arg0: i32) -> (i32, i32) {
    %c0_i32 = arith.constant 0 : i32
    %c0_i32_0 = arith.constant 0 : i32
    %c0_i32_1 = arith.constant 0 : i32
    return %c0_i32, %c0_i32_0 : i32, i32
  }
  func.func @transform_11(%arg0: i32) -> (i32, i32) {
    %c0_i32 = arith.constant 0 : i32
    %c0_i32_0 = arith.constant 0 : i32
    %c0_i32_1 = arith.constant 0 : i32
    return %c0_i32, %c0_i32_0 : i32, i32
  }
  func.func @transform_12(%arg0: i32) -> (i32, i32) {
    %c0_i32 = arith.constant 0 : i32
    %c0_i32_0 = arith.constant 0 : i32
    return %arg0, %c0_i32 : i32, i32
  }
}

</mosaic_0001>

<bundles_post_ra>
// kernel: tpu_custom_call.1
= control target key start
LH: loop header
LB: loop body
LE: loop exit
PB: predicated region body
PF: predicated region fallthrough
CT: control target
= control target key end

     0   :  { %s4945_s0 = inlined_call_operand.hbm [shape: f32[24,8,32], index: 0, kind: input, shape index: {}]   ;;  %s4946_s1 = inlined_call_operand.hbm [shape: f32[32,128], index: 1, kind: input, shape index: {}]   ;;  %s4947_s2 = inlined_call_operand.hbm [shape: f32[32,128], index: 2, kind: input, shape index: {}]   ;;  %s4948_s3 = inlined_call_operand.vmem [shape: f32[1,128], index: 3, kind: input, shape index: {}]   ;;  %s4949_s4 = inlined_call_operand.hbm [shape: f32[128,128], index: 4, kind: input, shape index: {}]   ;;  %s4950_s5 = inlined_call_operand.vmem [shape: f32[1,128], index: 5, kind: input, shape index: {}]   ;;  %s4951_s6 = inlined_call_operand.hbm [shape: f32[128,128], index: 6, kind: input, shape index: {}]   ;;  %s4952_s7 = inlined_call_operand.vmem [shape: f32[1,128], index: 7, kind: input, shape index: {}]   ;;  %s4953_s8 = inlined_call_operand.hbm [shape: f32[128,128], index: 8, kind: input, shape index: {}]   ;;  %s4954_s9 = inlined_call_operand.vmem [shape: f32[1,128], index: 9, kind: input, shape index: {}]   ;;  %s4955_s10 = inlined_call_operand.hbm [shape: f32[128,128], index: 10, kind: input, shape index: {}]   ;;  %s4956_s11 = inlined_call_operand.vmem [shape: f32[1,128], index: 11, kind: input, shape index: {}]   ;;  %s4957_s12 = inlined_call_operand.hbm [shape: f32[24,128], index: 12, kind: output, shape index: {}]  }
   0x1   :  { %4963 = sst [smem:[#allocation20_spill]] %s4946_s1 }
   0x2   :  { %4964 = sst [smem:[#allocation21_spill]] %s4952_s7 }
   0x3   :  { %4965 = sst [smem:[#allocation22_spill]] %s4954_s9 }
   0x4   :  { %4966 = sst [smem:[#allocation23_spill]] %s4956_s11 }
   0x5   :  { %4967 = sst [smem:[#allocation24_spill]] %s4957_s12 }
   0x6   :  { %17 = vsyncpa [#allocation3], 0 }
   0x7   :  { %19 = vsyncpa [#allocation3 + $0x1], 0 }
   0x8   :  { %20 = vsyncpa [#allocation6], 0 }
   0x9   :  { %21 = vsyncpa [#allocation9], 0 }
   0xa   :  { %22 = vsyncpa [#allocation12], 0 }
   0xb   :  { %23 = vsyncpa [#allocation4], 0 }
   0xc   :  { %25 = vsyncpa [#allocation4 + $0x1], 0  ;;  %s3777_s21 = smov 0   ;;  %s3779_s22 = smov 0  }
   0xd   :  { %s3781_s23 = smov 0   ;;  %s3783_s24 = smov 0  }
   0xe LB: > { %s3698_s25 = smov [#allocation5]   ;;  %s3798_s27 = sadd.s32 4294967295, %s3696_s24   ;;  %s3696_s24 = sphi %s3783_s24, %s5015_s24   ;;  %s3692_s23 = sphi %s3781_s23, %s5014_s23   ;;  %s3688_s22 = sphi %s3779_s22, %s5013_s22   ;;  %s3684_s21 = sphi %s3777_s21, %s5012_s21  }
   0xf   : > { %s331_s26 = sshll.u32 %s3698_s25, 4  ;;  %p2713_p0 = scmp.ge.s32.totalorder %s3696_s24, 1  ;;  %s3803_s26 = int_to_ptr.vmem [resolvable:$true] %s331_s26 }
  0x10   : > { %p4959_p1 = scmp.eq.s32.totalorder %s3798_s27, 0  ;;  %p319_p2 = scmp.lt.s32.totalorder %s3696_s24, 4 }
  0x11   : > { %s3699_s29 = smov [#allocation8]   ;;  %s3700_s14 = smov [#allocation11]  }
  0x12   : > { %p3805_p3 = pnand %p2713_p0, %p319_p2  ;;  %s360_s30 = sshll.u32 %s3699_s29, 4  ;;  %s3817_s30 = int_to_ptr.vmem [resolvable:$true] %s360_s30 }
  0x13   : > { %s392_s15 = sshll.u32 %s3700_s14, 4  ;;  %s4970_s1 = sld [smem:[#allocation20_spill]]  ;;  %s3819_s15 = int_to_ptr.vmem [resolvable:$true] %s392_s15 }
  0x14   : > { %s4968_s28 = scalar_select %p3805_p3, 1, 0 }
  0x15   : > { %p3335_p4 = pneg %p3805_p3 }
  0x17   : > { %p3813_p5 = pnand %p3335_p4, %p4959_p1 }
  0x19   : > { %s3420_s18 = scalar_lea.hbm %s4970_s1, 512  ;;  %p3829_p7 = pneg %p3813_p5 }
  0x1a   : > { %p3421_p6 = scmp.ne.s32.totalorder %s4970_s1, %s3420_s18  ;;  %p3427_p10 = scmp.lt.u32.totalorder %s3420_s18, %s4970_s1 }
  0x1c   : > { %p3423_p8 = pnand %p3829_p7, %p3421_p6 }
  0x1e   : > { %p3424_p9 = pneg %p3423_p8 }
  0x20   : > { %p3429_p11 = pnand %p3427_p10, %p3424_p9 }
  0x22   : > { %3432 = shalt.err (!%p3429_p11)
}
  0x23   : > { %s3433_s16 = scalar_lea.vmem %s3803_s26, 512  ;;  %p3441_p2 = scmp.lt.s32.totalorder %s3803_s26, %s3803_s26 }
  0x24   : > { %p3434_p12 = scmp.ne.s32.totalorder %s3803_s26, %s3433_s16  ;;  %p3442_p4 = scmp.lt.s32.totalorder %s3433_s16, %s3433_s16 }
  0x26   : > { %p3436_p13 = pnand %p3434_p12, %p3829_p7  ;;  %p3443_p6 = por %p3442_p4, %p3441_p2 }
  0x28   : > { %p3437_p0 = pneg %p3436_p13 }
  0x2a   : > { %p3444_p8 = pnand %p3443_p6, %p3437_p0 }
  0x2c   : > { %3447 = shalt.err (!%p3444_p8)
}
  0x2d   : > { %s4961_s17 = smov 128   ;;  %s3702_s18 = smov 8  }
  0x2e   : > { %3338 = dma.hbm_to_vmem [thread:$0]  (!%p3813_p5), %s4970_s1, 512, %s3803_s26, [#allocation6], %s4961_s17, %s4961_s17, %s3702_s18  }
  0x2f   : > { %s3448_s16 = scalar_lea.hbm %s4949_s4, 2048 }
  0x30   : > { %p3449_p9 = scmp.ne.s32.totalorder %s4949_s4, %s3448_s16  ;;  %p3455_p12 = scmp.lt.u32.totalorder %s3448_s16, %s4949_s4 }
  0x32   : > { %p3451_p10 = pnand %p3449_p9, %p3829_p7 }
  0x34   : > { %p3452_p11 = pneg %p3451_p10 }
  0x36   : > { %p3457_p13 = pnand %p3455_p12, %p3452_p11 }
  0x38   : > { %3460 = shalt.err (!%p3457_p13)
}
  0x39   : > { %s3461_s26 = scalar_lea.vmem %s3817_s30, 2048  ;;  %p3469_p6 = scmp.lt.s32.totalorder %s3817_s30, %s3817_s30 }
  0x3a   : > { %p3462_p0 = scmp.ne.s32.totalorder %s3817_s30, %s3461_s26  ;;  %p3470_p8 = scmp.lt.s32.totalorder %s3461_s26, %s3461_s26 }
  0x3c   : > { %p3464_p2 = pnand %p3462_p0, %p3829_p7  ;;  %p3471_p9 = por %p3470_p8, %p3469_p6 }
  0x3e   : > { %p3465_p4 = pneg %p3464_p2 }
  0x40   : > { %p3472_p10 = pnand %p3471_p9, %p3465_p4 }
  0x42   : > { %3475 = shalt.err (!%p3472_p10)
}
  0x43   : > { %3344 = dma.hbm_to_vmem [thread:$0]  (!%p3813_p5), %s4949_s4, 2048, %s3817_s30, [#allocation9], %s4961_s17, %s4961_s17, %s3702_s18  }
  0x44   : > { %s3476_s19 = scalar_lea.hbm %s4953_s8, 2048 }
  0x45   : > { %p3477_p11 = scmp.ne.s32.totalorder %s4953_s8, %s3476_s19  ;;  %p3483_p0 = scmp.lt.u32.totalorder %s3476_s19, %s4953_s8 }
  0x47   : > { %p3479_p12 = pnand %p3477_p11, %p3829_p7 }
  0x49   : > { %p3480_p13 = pneg %p3479_p12 }
  0x4b   : > { %p3485_p2 = pnand %p3483_p0, %p3480_p13 }
  0x4d   : > { %3488 = shalt.err (!%p3485_p2)
}
  0x4e   : > { %s3489_s30 = scalar_lea.vmem %s3819_s15, 2048  ;;  %p3497_p9 = scmp.lt.s32.totalorder %s3819_s15, %s3819_s15 }
  0x4f   : > { %p3490_p4 = scmp.ne.s32.totalorder %s3819_s15, %s3489_s30  ;;  %p3498_p10 = scmp.lt.s32.totalorder %s3489_s30, %s3489_s30 }
  0x51   : > { %p3492_p6 = pnand %p3490_p4, %p3829_p7  ;;  %p3499_p11 = por %p3498_p10, %p3497_p9 }
  0x53   : > { %p3493_p8 = pneg %p3492_p6 }
  0x55   : > { %p3500_p12 = pnand %p3499_p11, %p3493_p8 }
  0x57   : > { %3503 = shalt.err (!%p3500_p12)
}
  0x58   : > { %3350 = dma.hbm_to_vmem [thread:$0]  (!%p3813_p5), %s4953_s8, 2048, %s3819_s15, [#allocation12], %s4961_s17, %s4961_s17, %s3702_s18  }
  0x59   : > { %s3703_s9 = smov [#allocation7]   ;;  %s3704_s12 = smov [#allocation10]  }
  0x5a   : > { %s344_s11 = sshll.u32 %s3703_s9, 4  ;;  %s376_s19 = sshll.u32 %s3704_s12, 4  ;;  %s345_s11 = int_to_ptr.vmem [resolvable:$true] %s344_s11  ;;  %s377_s19 = int_to_ptr.vmem [resolvable:$true] %s376_s19 }
  0x5b   : > { %s3504_s14 = scalar_lea.hbm %s4947_s2, 512 }
  0x5c   : > { %p3505_p13 = scmp.ne.s32.totalorder %s4947_s2, %s3504_s14  ;;  %p3511_p4 = scmp.lt.u32.totalorder %s3504_s14, %s4947_s2 }
  0x5e   : > { %p3507_p0 = pnand %p3505_p13, %p3829_p7 }
  0x60   : > { %p3508_p2 = pneg %p3507_p0 }
  0x62   : > { %p3513_p6 = pnand %p3511_p4, %p3508_p2 }
  0x64   : > { %3516 = shalt.err (!%p3513_p6)
}
  0x65   : > { %s3517_s15 = scalar_lea.vmem %s345_s11, 512  ;;  %p3525_p11 = scmp.lt.s32.totalorder %s345_s11, %s345_s11 }
  0x66   : > { %p3518_p8 = scmp.ne.s32.totalorder %s345_s11, %s3517_s15  ;;  %p3526_p12 = scmp.lt.s32.totalorder %s3517_s15, %s3517_s15 }
  0x68   : > { %p3520_p9 = pnand %p3518_p8, %p3829_p7  ;;  %p3527_p1 = por %p3526_p12, %p3525_p11 }
  0x6a   : > { %p3521_p10 = pneg %p3520_p9 }
  0x6c   : > { %p3528_p3 = pnand %p3527_p1, %p3521_p10 }
  0x6e   : > { %3531 = shalt.err (!%p3528_p3)
}
  0x6f   : > { %3341 = dma.hbm_to_vmem [thread:$0]  (!%p3813_p5), %s4947_s2, 512, %s345_s11, [#allocation6], %s4961_s17, %s4961_s17, %s3702_s18  }
  0x70   : > { %s3532_s20 = scalar_lea.hbm %s4951_s6, 2048 }
  0x71   : > { %p3533_p1 = scmp.ne.s32.totalorder %s4951_s6, %s3532_s20  ;;  %p3539_p0 = scmp.lt.u32.totalorder %s3532_s20, %s4951_s6 }
  0x73   : > { %p3535_p3 = pnand %p3533_p1, %p3829_p7 }
  0x75   : > { %p3536_p13 = pneg %p3535_p3 }
  0x77   : > { %p3541_p2 = pnand %p3539_p0, %p3536_p13 }
  0x79   : > { %3544 = shalt.err (!%p3541_p2)
}
  0x7a   : > { %s3545_s26 = scalar_lea.vmem %s377_s19, 2048  ;;  %p3553_p9 = scmp.lt.s32.totalorder %s377_s19, %s377_s19 }
  0x7b   : > { %p3546_p4 = scmp.ne.s32.totalorder %s377_s19, %s3545_s26  ;;  %p3554_p10 = scmp.lt.s32.totalorder %s3545_s26, %s3545_s26 }
  0x7d   : > { %p3548_p6 = pnand %p3546_p4, %p3829_p7  ;;  %p3555_p11 = por %p3554_p10, %p3553_p9 }
  0x7f   : > { %p3549_p8 = pneg %p3548_p6 }
  0x81   : > { %p3556_p12 = pnand %p3555_p11, %p3549_p8 }
  0x83   : > { %3559 = shalt.err (!%p3556_p12)
}
  0x84   : > { %3347 = dma.hbm_to_vmem [thread:$0]  (!%p3813_p5), %s4951_s6, 2048, %s377_s19, [#allocation9], %s4961_s17, %s4961_s17, %s3702_s18  }
  0x85   : > { %s3705_s1 = smov [#allocation13]   ;;  %s3560_s20 = scalar_lea.hbm %s4955_s10, 2048 }
  0x86   : > { %s408_s7 = sshll.u32 %s3705_s1, 4  ;;  %p3561_p1 = scmp.ne.s32.totalorder %s4955_s10, %s3560_s20  ;;  %s409_s7 = int_to_ptr.vmem [resolvable:$true] %s408_s7 }
  0x87   : > { %p3567_p0 = scmp.lt.u32.totalorder %s3560_s20, %s4955_s10 }
  0x88   : > { %p3563_p3 = pnand %p3561_p1, %p3829_p7 }
  0x8a   : > { %p3564_p13 = pneg %p3563_p3 }
  0x8c   : > { %p3569_p2 = pnand %p3567_p0, %p3564_p13 }
  0x8e   : > { %3572 = shalt.err (!%p3569_p2)
}
  0x8f   : > { %s3573_s19 = scalar_lea.vmem %s409_s7, 2048  ;;  %p3581_p9 = scmp.lt.s32.totalorder %s409_s7, %s409_s7 }
  0x90   : > { %p3574_p4 = scmp.ne.s32.totalorder %s409_s7, %s3573_s19  ;;  %p3582_p10 = scmp.lt.s32.totalorder %s3573_s19, %s3573_s19 }
  0x92   : > { %p3576_p6 = pnand %p3574_p4, %p3829_p7  ;;  %p3583_p11 = por %p3582_p10, %p3581_p9 }
  0x94   : > { %p3577_p8 = pneg %p3576_p6 }
  0x96   : > { %p3584_p12 = pnand %p3583_p11, %p3577_p8 }
  0x98   : > { %3587 = shalt.err (!%p3584_p12)
}
  0x99   : > { %3353 = dma.hbm_to_vmem [thread:$0]  (!%p3813_p5), %s4955_s10, 2048, %s409_s7, [#allocation12], %s4961_s17, %s4961_s17, %s3702_s18  }
  0x9a   : > { %s2712_s13 = sadd.s32 4294967294, %s3696_s24   ;;  %s3970_s25 = sadd.s32 1, %s3696_s24  }
  0x9b   : > { %s35_s15 = ssub.s32 %s3696_s24, %s3970_s25  ;;  %s38_s1 = sadd.s32 1, %s3692_s23 }
  0x9c   : > { %p36_p7 = scmp.eq.s32.totalorder %s35_s15, 0  ;;  %p45_p1 = scmp.ne.s32.totalorder %s3692_s23, %s3688_s22 }
  0x9d   : > { %p46_p3 = scmp.eq.s32.totalorder %s3696_s24, 0  ;;  %p51_p13 = scmp.ne.s32.totalorder %s3688_s22, %s3684_s21 }
  0x9e   : > { %s3981_s9 = scalar_select %p36_p7, %s3692_s23, %s38_s1  }
  0x9f   : > { %p3983_p0 = por %p46_p3, %p45_p1  ;;  %p4973_p2 = scmp.eq.s32.totalorder %s3798_s27, 0 }
  0xa0   : > { %p306_p4 = scmp.eq.s32.totalorder %s3798_s27, 2  ;;  %p312_p6 = scmp.eq.s32.totalorder %s2712_s13, 2 }
  0xa1   : > { %p3989_p5 = por %p4973_p2, %p51_p13  ;;  %p3368_p8 = scmp.lt.s32.totalorder %s3696_s24, 3 }
  0xa2   : > { %s425_s20 = sand.u32 1, %s3692_s23   ;;  %p3996_p9 = por %p306_p4, %p45_p1 }
  0xa3   : > { %p4000_p10 = por %p312_p6, %p51_p13  ;;  %s2721_s16 = sshll.u32 %s425_s20, 6 }
  0xa4   : > { %s4975_s29 = scalar_select %p3996_p9, 1, 0 }
  0xa5   : > { %s4976_s14 = scalar_select %p4000_p10, 1, 0 }
  0xa6   : > { %s2758_s30 = sshll.u32 %s3696_s24, 10  ;;  %s429_s13 = scalar_lea.vmem [#allocation2], %s2721_s16 }
  0xa7   : > { %s4008_s11 = scalar_lea.hbm %s4945_s0, %s2758_s30  ;;  %s436_s15 = sshll.u32 %s429_s13, 4  ;;  %s4010_s15 = int_to_ptr.vmem [resolvable:$true] %s436_s15 }
  0xa8   : > { %p4014_p11 = pnand %p3368_p8, %p3983_p0  ;;  %s4018_s17 = scalar_lea.sflag [#allocation3], %s425_s20 }
  0xa9   : > { %s3588_s19 = scalar_lea.hbm %s4008_s11, 1024  ;;  %s3593_s12 = scalar_lea.hbm %s4945_s0, 3072 }
  0xaa   : > { %p3589_p12 = scmp.ne.s32.totalorder %s4008_s11, %s3588_s19  ;;  %p3590_p7 = pneg %p4014_p11 }
  0xab   : > { %p3594_p13 = scmp.lt.u32.totalorder %s4008_s11, %s4945_s0  ;;  %p3595_p0 = scmp.lt.u32.totalorder %s3593_s12, %s3588_s19 }
  0xac   : > { %p3591_p1 = pnand %p3590_p7, %p3589_p12  ;;  %p3597_p4 = scmp.lt.u32.totalorder %s3588_s19, %s4008_s11 }
  0xad   : > { %p3596_p2 = por %p3595_p0, %p3594_p13 }
  0xae   : > { %p3592_p3 = pneg %p3591_p1 }
  0xaf   : > { %p3598_p6 = por %p3597_p4, %p3596_p2 }
  0xb1   : > { %p3599_p8 = pnand %p3598_p6, %p3592_p3 }
  0xb3   : > { %3602 = shalt.err (!%p3599_p8)
}
  0xb4   : > { %s3603_s20 = scalar_lea.vmem %s4010_s15, 1024  ;;  %s3706_s16 = smov [#allocation2]  }
  0xb5   : > { %p3604_p12 = scmp.ne.s32.totalorder %s4010_s15, %s3603_s20  ;;  %s3608_s30 = sshll.u32 %s3706_s16, 4  ;;  %s3609_s30 = int_to_ptr.vmem [resolvable:$false] %s3608_s30 }
  0xb6   : > { %s3610_s26 = scalar_lea.vmem %s3609_s30, 2048  ;;  %p3611_p9 = scmp.lt.s32.totalorder %s4010_s15, %s3609_s30 }
  0xb7   : > { %p3606_p1 = pnand %p3604_p12, %p3590_p7  ;;  %p3612_p13 = scmp.lt.s32.totalorder %s3610_s26, %s3603_s20 }
  0xb9   : > { %p3607_p10 = pneg %p3606_p1  ;;  %p3613_p0 = por %p3612_p13, %p3611_p9 }
  0xbb   : > { %p3614_p2 = pnand %p3613_p0, %p3607_p10 }
  0xbd   : > { %3617 = shalt.err (!%p3614_p2)
}
  0xbe   : > { %s4978_s19 = smov 128   ;;  %p4979_p7 = scmp.ne.s32.totalorder %s4968_s28, 0 }
  0xbf   : > { %3357 = dma.hbm_to_vmem [thread:$0]  (!%p4014_p11), %s4008_s11, 1024, %s4010_s15, %s4018_s17, %s4978_s19, %s4978_s19, %s3702_s18  }
  0xc0   : > { %448 = sbr.rel (%p4979_p7) target bundleno = 1498 (0x5da), region = 68  ;;  %s4052_s12 = sand.u32 (!%p4979_p7), 1, %s3688_s22  }
  0xc1   : > { %s2725_s13 = sshll.u32 (!%p4979_p7), %s4052_s12, 6  ;;  %s451_s20 = scalar_lea.sflag (!%p4979_p7), [#allocation3], %s4052_s12 }
  0xc2   : > { %s4056_s16 = scalar_lea.vmem (!%p4979_p7), [#allocation2], %s2725_s13 }
  0xc7   : > { %3663 = dma.done.wait (%p3989_p5), %s451_s20, 1024  }
  0xc8   : > { %3665 = vsyncadd (%p3989_p5), %s451_s20, 4294966272  ;;  %p4980_p9 = scmp.eq.s32.totalorder %s3798_s27, 0 }
  0xca   : > { %3667 = dma.done.wait (%p4980_p9), [#allocation6], 1024   ;;  %p4981_p10 = pmov %p4980_p9 }
  0xcb   : > { %p4982_p11 = pmov %p4980_p9 }
  0xcc   : > { %3669 = vsyncadd (%p4981_p10), [#allocation6], 4294966272 }
  0xcd   : > { %3671 = dma.done.wait (%p4982_p11), [#allocation9], 4096   ;;  %p4983_p3 = pmov %p4980_p9 }
  0xcf   : > { %3673 = vsyncadd (%p4983_p3), [#allocation9], 4294963200  ;;  %p4984_p4 = pmov %p4983_p3 }
  0xd0   : > { %p4985_p6 = pmov %p4983_p3 }
  0xd1   : > { %3675 = dma.done.wait (%p4984_p4), [#allocation12], 4096  }
  0xd2   : > { %3677 = vsyncadd (%p4985_p6), [#allocation12], 4294963200  ;;  %vm532_vm0 = vcmask 261120   ;;  %v528_v0 = vld [vmem:[#allocation5] sm:$0xff]  ;;  %v529_v1 = vld [vmem:[#allocation5 + $0x8] sm:$0xff]  ;;  %v783_v52 = vlaneseq  ;;  %vm3709_vm1 = vmmov 0  }
  0xd3   : > { %v530_v2 = vld [vmem:[#allocation5 + $0x10] sm:$0xff]  ;;  %v3187_v3 = vpack.c.bf16 %v529_v1, %v528_v0  ;;  %v531_v4 = vld [vmem:[#allocation5 + $0x18] sm:$0xff]  ;;  %v520_v5 = vld [vmem:[%s4056_s16] sm:$0xff]  ;;  %v3707_v50 = vmov 1966171168   ;;  %vm2297_vm2 = vcmask 1041409  }
  0xd4   : > { %v3191_v6 = vpack.c.bf16 %v531_v4, %v530_v2  ;;  %2922 = vmatprep.mubr.msk.f32.mxu1 %vm532_vm0, %v520_v5  ;;  %v662_v7 = vld [vmem:[#allocation7] sm:$0xff]  ;;  %v663_v8 = vld [vmem:[#allocation7 + $0x8] sm:$0xff]  ;;  %v664_v10 = vld [vmem:[#allocation7 + $0x10] sm:$0xff]  ;;  %v781_v51 = vunpack.c.l.s4 %v3707_v50  ;;  %v784_v56 = vshrl.u32 %v783_v52, 7  ;;  %vm2299_vm3 = vcmask 1042434   ;;  %s5006_s1 = sld [smem:[#allocation21_spill]] }
  0xd5   : > { %3188 = vmatprep.subr.bf16.mxu1 %v3187_v3  ;;  %v3195_v9 = vpack.c.bf16 %v663_v8, %v662_v7  ;;  %v665_v11 = vld [vmem:[#allocation7 + $0x18] sm:$0xff]  ;;  %v521_v12 = vld [vmem:[%s4056_s16 + $0x8] sm:$0xff]  ;;  %v522_v13 = vld [vmem:[%s4056_s16 + $0x10] sm:$0xff]  ;;  %vm2301_vm4 = vcmask 1043459   ;;  %vm2303_vm5 = vcmask 1044484   ;;  %vm2305_vm6 = vcmask 1045509  }
  0xd6   : > { %3190 = vmatpush3.bf16.msra.mxu1 %v3187_v3  ;;  %v3199_v14 = vpack.c.bf16 %v665_v11, %v664_v10  ;;  %v523_v15 = vld [vmem:[%s4056_s16 + $0x18] sm:$0xff]  ;;  %v524_v16 = vld [vmem:[%s4056_s16 + $0x20] sm:$0xff]  ;;  %v525_v17 = vld [vmem:[%s4056_s16 + $0x28] sm:$0xff]  ;;  %v782_v55 = vunpack.c.0.s8 %v781_v51  ;;  %vm2307_vm7 = vcmask 1046534   ;;  %vm2309_vm8 = vcmask 1047559   ;;  %s5007_s19 = sld [smem:[#allocation22_spill]] }
  0xd7   : > { %3192 = vmatprep.subr.bf16.mxu1 %v3191_v6  ;;  %v526_v18 = vld [vmem:[%s4056_s16 + $0x30] sm:$0xff]  ;;  %v527_v19 = vld [vmem:[%s4056_s16 + $0x38] sm:$0xff]  ;;  %v1690_v20 = vld [vmem:[#allocation8] sm:$0xff]  ;;  %s2732_s13 = sshll.u32 %s4052_s12, 3  ;;  %s5008_s28 = sld [smem:[#allocation23_spill]] }
  0xd8   : > { %v1691_v21 = vld [vmem:[#allocation8 + $0x8] sm:$0xff]  ;;  %v1692_v23 = vld [vmem:[#allocation8 + $0x10] sm:$0xff]  ;;  %v1693_v24 = vld [vmem:[#allocation8 + $0x18] sm:$0xff]  ;;  %v4114_v58 = vsub.s32 %v782_v55, %v784_v56  ;;  %s2755_s17 = sshll.u32 %s3798_s27, 7  ;;  %s518_s18 = scalar_lea.vmem [#allocation14], %s2732_s13 }
  0xd9   : > { %v3203_v22 = vpack.c.bf16 %v1691_v21, %v1690_v20  ;;  %v3207_v25 = vpack.c.bf16 %v1693_v24, %v1692_v23  ;;  %v1694_v26 = vld [vmem:[#allocation8 + $0x20] sm:$0xff]  ;;  %v1695_v27 = vld [vmem:[#allocation8 + $0x28] sm:$0xff]  ;;  %v1696_v29 = vld [vmem:[#allocation8 + $0x30] sm:$0xff]  ;;  %s2585_s7 = sshll.u32 %s518_s18, 4  ;;  %s2572_s26 = scalar_lea.sflag [#allocation4], %s4052_s12  ;;  %s4904_s7 = int_to_ptr.vmem [resolvable:$true] %s2585_s7 }
  0xda   : > { %3194 = vmatpush3.bf16.msra.mxu1 %v3191_v6  ;;  %v3211_v28 = vpack.c.bf16 %v1695_v27, %v1694_v26  ;;  %v1697_v30 = vld [vmem:[#allocation8 + $0x38] sm:$0xff]  ;;  %v1698_v32 = vld [vmem:[#allocation8 + $0x40] sm:$0xff]  ;;  %v1699_v33 = vld [vmem:[#allocation8 + $0x48] sm:$0xff]  ;;  %p5010_p8 = scmp.ne.s32.totalorder %s4975_s29, 0  ;;  %s3711_s27 = smov [#allocation14]  }
  0xdb   : > { %3196 = vmatprep.subr.bf16.mxu1 %v3195_v9  ;;  %3204 = vmatprep.subr.bf16.mxu0 %v3203_v22  ;;  %v3215_v31 = vpack.c.bf16 %v1697_v30, %v1696_v29  ;;  %v3219_v34 = vpack.c.bf16 %v1699_v33, %v1698_v32  ;;  %v1700_v35 = vld [vmem:[#allocation8 + $0x50] sm:$0xff]  ;;  %v1701_v36 = vld [vmem:[#allocation8 + $0x58] sm:$0xff]  ;;  %v1702_v38 = vld [vmem:[#allocation8 + $0x60] sm:$0xff]  ;;  %s3622_s13 = sshll.u32 %s3711_s27, 4  ;;  %s3623_s13 = int_to_ptr.vmem [resolvable:$false] %s3622_s13 }
  0xdc   : > { %3206 = vmatpush3.bf16.msra.mxu0 %v3203_v22  ;;  %v3223_v37 = vpack.c.bf16 %v1701_v36, %v1700_v35  ;;  %v1703_v39 = vld [vmem:[#allocation8 + $0x68] sm:$0xff]  ;;  %v1704_v41 = vld [vmem:[#allocation8 + $0x70] sm:$0xff]  ;;  %v1705_v42 = vld [vmem:[#allocation8 + $0x78] sm:$0xff]  ;;  %s3624_s20 = scalar_lea.vmem %s3623_s13, 256  ;;  %p3625_p13 = scmp.lt.s32.totalorder %s4904_s7, %s3623_s13 }
  0xdd   : > { %2923 = vmatmul.mubr.msk.f32.vlgmr.msra.gmra.mrb[0].mxu1 %vm532_vm0, %v521_v12  ;;  %3208 = vmatprep.subr.bf16.mxu0 %v3207_v25  ;;  %v3227_v40 = vpack.c.bf16 %v1703_v39, %v1702_v38  ;;  %v3231_v43 = vpack.c.bf16 %v1705_v42, %v1704_v41 }
  0xde   : > { %3198 = vmatpush3.bf16.msra.mxu1 %v3195_v9  ;;  %2925 = vmatprep.mubr.msk.f32.mxu1 %vm532_vm0, %v522_v13 }
  0xdf   : > { %3200 = vmatprep.subr.bf16.mxu1 %v3199_v14 }
  0xe0   : > { %3210 = vmatpush3.bf16.msra.mxu0 %v3207_v25 }
  0xe1   : > { %2926 = vmatmul.mubr.msk.f32.gmra.mrb[2].mxu1 %vm532_vm0, %v523_v15  ;;  %3212 = vmatprep.subr.bf16.mxu0 %v3211_v28 }
  0xe2   : > { %2928 = vmatprep.mubr.msk.f32.mxu1 %vm532_vm0, %v524_v16  ;;  %3202 = vmatpush3.bf16.msra.mxu1 %v3199_v14 }
  0xe4   : > { %3214 = vmatpush3.bf16.msra.mxu0 %v3211_v28 }
  0xe5   : > { %2929 = vmatmul.mubr.msk.f32.gmra.mrb[4].mxu1 %vm532_vm0, %v525_v17  ;;  %3216 = vmatprep.subr.bf16.mxu0 %v3215_v31 }
  0xe6   : > { %2931 = vmatprep.mubr.msk.f32.mxu1 %vm532_vm0, %v526_v18 }
  0xe8   : > { %3218 = vmatpush3.bf16.msra.mxu0 %v3215_v31 }
  0xe9   : > { %2932 = vmatmul.mubr.msk.f32.gmra.mrb[6].mxu1 %vm532_vm0, %v527_v19  ;;  %3220 = vmatprep.subr.bf16.mxu0 %v3219_v34 }
  0xea   : > { %2942 = vmatprep.mubr.msk.f32.mxu1 %vm532_vm0, %v520_v5 }
  0xec   : > { %3222 = vmatpush3.bf16.msra.mxu0 %v3219_v34 }
  0xed   : > { %2943 = vmatmul.mubr.msk.f32.vlgmr.msra.gmra.mrb[8].mxu1 %vm532_vm0, %v521_v12  ;;  %3224 = vmatprep.subr.bf16.mxu0 %v3223_v37  ;;  %v4126_v12 = vsub.s32 0, %v784_v56 }
  0xee   : > { %2945 = vmatprep.mubr.msk.f32.mxu1 %vm532_vm0, %v522_v13 }
  0xf0   : > { %3226 = vmatpush3.bf16.msra.mxu0 %v3223_v37 }
  0xf1   : > { %2946 = vmatmul.mubr.msk.f32.gmra.mrb[10].mxu1 %vm532_vm0, %v523_v15  ;;  %3228 = vmatprep.subr.bf16.mxu0 %v3227_v40 }
  0xf2   : > { %2948 = vmatprep.mubr.msk.f32.mxu1 %vm532_vm0, %v524_v16 }
  0xf4   : > { %3230 = vmatpush3.bf16.msra.mxu0 %v3227_v40 }
  0xf5   : > { %2949 = vmatmul.mubr.msk.f32.gmra.mrb[12].mxu1 %vm532_vm0, %v525_v17  ;;  %3232 = vmatprep.subr.bf16.mxu0 %v3231_v43 }
  0xf6   : > { %2951 = vmatprep.mubr.msk.f32.mxu1 %vm532_vm0, %v526_v18 }
  0xf8   : > { %3234 = vmatpush3.bf16.msra.mxu0 %v3231_v43 }
  0xf9   : > { %2952 = vmatmul.mubr.msk.f32.gmra.mrb[14].mxu1 %vm532_vm0, %v527_v19 }
 0x1b0   : > { %v4098_v44 = vpop.f32.mrb[0].mxu1 }
 0x1b1   : > { %v4100_v45 = vpop.f32.mrb[1].mxu1 }
 0x1b4   : > { %v4102_v46 = vpop.f32.mrb[2].mxu1 }
 0x1b5   : > { %v4104_v47 = vpop.f32.mrb[3].mxu1 }
 0x1b8   : > { %v4106_v48 = vpop.f32.mrb[4].mxu1 }
 0x1b9   : > { %v4108_v49 = vpop.f32.mrb[5].mxu1 }
 0x1bc   : > { %v4110_v53 = vpop.f32.mrb[6].mxu1 }
 0x1bd   : > { %v4112_v54 = vpop.f32.mrb[7].mxu1 }
 0x1c0   : > { %v2944_v57 = vpop.f32.mrb[8].mxu1 }
 0x1c1   : > { %v732_v59 = vpop.f32.mrb[9].mxu1  ;;  %v828_v60 = vcombine.high %v2944_v57, %v2944_v57  ;;  %v835_v62 = vrot.slane %v2944_v57, %v4114_v58 }
 0x1c2   : > { %v779_v1 = vcombine.high %v732_v59, %v732_v59  ;;  %v786_v2 = vrot.slane %v732_v59, %v4114_v58 }
 0x1c3   : > { %v842_v0 = vrot.slane %v828_v60, %v4114_v58  ;;  %v843_v4 = vcombine.high %v835_v62, %v835_v62  ;;  %v4120_v5 = vrot.slane %v835_v62, %v4114_v58 }
 0x1c4   : > { %v2947_v61 = vpop.f32.mrb[10].mxu1  ;;  %v793_v8 = vrot.slane %v779_v1, %v4114_v58  ;;  %v794_v9 = vcombine.high %v786_v2, %v786_v2  ;;  %v4141_v21 = vrot.slane %v786_v2, %v4114_v58 }
 0x1c5   : > { %v742_v63 = vpop.f32.mrb[11].mxu1  ;;  %v844_v7 = vcombine.high %v842_v0, %v842_v0  ;;  %v4124_v11 = vrot.slane %v842_v0, %v4114_v58  ;;  %v4131_v16 = vrot.slane %v843_v4, %v4114_v58  ;;  %v873_v17 = vcombine.high %v4120_v5, %v4120_v5 }
 0x1c6   : > { %v795_v20 = vcombine.high %v793_v8, %v793_v8  ;;  %v4145_v23 = vrot.slane %v793_v8, %v4114_v58  ;;  %v4148_v24 = vrot.slane %v794_v9, %v4114_v58  ;;  %v1206_v26 = vrot.slane %v4120_v5, %v4126_v12 }
 0x1c7   : > { %v4138_v19 = vrot.slane %v844_v7, %v4114_v58  ;;  %v926_v27 = vcombine.high %v2947_v61, %v2947_v61  ;;  %v875_v28 = vcombine.high %v4131_v16, %v4131_v16  ;;  %v1210_v29 = vrot.slane %v4131_v16, %v4126_v12 }
 0x1c8   : > { %v2950_v3 = vpop.f32.mrb[12].mxu1  ;;  %v4159_v30 = vrot.slane %v873_v17, %v4126_v12  ;;  %v4166_v34 = vrot.slane %v795_v20, %v4114_v58  ;;  %v824_v35 = vcombine.high %v4141_v21, %v4141_v21  ;;  %v825_v36 = vcombine.high %v4145_v23, %v4145_v23 }
 0x1c9   : > { %v752_v6 = vpop.f32.mrb[13].mxu1  ;;  %v1024_v10 = vcombine.high %v2950_v3, %v2950_v3  ;;  %v1031_v13 = vrot.slane %v2950_v3, %v4114_v58  ;;  %v826_v37 = vcombine.high %v4148_v24, %v4148_v24  ;;  %v933_v38 = vrot.slane %v2947_v61, %v4114_v58 }
 0x1ca   : > { %v982_v14 = vrot.slane %v752_v6, %v4114_v58  ;;  %v975_v31 = vcombine.high %v752_v6, %v752_v6  ;;  %v877_v39 = vcombine.high %v742_v63, %v742_v63  ;;  %v940_v40 = vrot.slane %v926_v27, %v4114_v58 }
 0x1cb   : > { %v1038_v22 = vrot.slane %v1024_v10, %v4114_v58  ;;  %v884_v41 = vrot.slane %v742_v63, %v4114_v58  ;;  %v1039_v42 = vcombine.high %v1031_v13, %v1031_v13  ;;  %v4178_v50 = vrot.slane %v1031_v13, %v4114_v58 }
 0x1cc   : > { %v2953_v15 = vpop.f32.mrb[14].mxu1  ;;  %v989_v52 = vrot.slane %v975_v31, %v4114_v58  ;;  %v990_v55 = vcombine.high %v982_v14, %v982_v14  ;;  %v4191_v59 = vrot.slane %v982_v14, %v4114_v58  ;;  %v827_v61 = vcombine.high %v4166_v34, %v4166_v34 }
 0x1cd   : > { %v4135_v18 = vpop.f32.mrb[15].mxu1  ;;  %v1040_v43 = vcombine.high %v1038_v22, %v1038_v22  ;;  %v4181_v51 = vrot.slane %v1038_v22, %v4114_v58  ;;  %v4185_v56 = vrot.slane %v1039_v42, %v4114_v58  ;;  %v1122_v60 = vcombine.high %v2953_v15, %v2953_v15 }
 0x1ce   : > { %v1178_v62 = vrot.slane %v4148_v24, %v4126_v12  ;;  %v941_v63 = vcombine.high %v933_v38, %v933_v38  ;;  %v4198_v0 = vrot.slane %v933_v38, %v4114_v58  ;;  %v1182_v1 = vrot.slane %v824_v35, %v4126_v12 }
 0x1cf   : > { %v4188_v57 = vrot.slane %v1040_v43, %v4114_v58  ;;  %v942_v2 = vcombine.high %v940_v40, %v940_v40  ;;  %v891_v3 = vrot.slane %v877_v39, %v4114_v58  ;;  %v991_v4 = vcombine.high %v989_v52, %v989_v52 }
 0x1d0   : > { %v1190_v6 = vrot.slane %v4145_v23, %v4126_v12  ;;  %v892_v7 = vcombine.high %v884_v41, %v884_v41  ;;  %v4205_v8 = vrot.slane %v989_v52, %v4114_v58  ;;  %v4208_v9 = vrot.slane %v990_v55, %v4114_v58 }
 0x1d1   : > { %v4211_v10 = vrot.slane %v940_v40, %v4114_v58  ;;  %v4214_v13 = vrot.slane %v991_v4, %v4114_v58  ;;  %v1129_v14 = vrot.slane %v2953_v15, %v4114_v58  ;;  %v1136_v17 = vrot.slane %v1122_v60, %v4114_v58 }
 0x1d2   : > { %v4219_v20 = vrot.slane %v941_v63, %v4114_v58  ;;  %v971_v22 = vcombine.high %v4198_v0, %v4198_v0  ;;  %v4226_v31 = vrot.slane %v884_v41, %v4114_v58  ;;  %v4229_v35 = vrot.slane %v942_v2, %v4114_v58 }
 0x1d3   : > { %v893_v38 = vcombine.high %v891_v3, %v891_v3  ;;  %v1137_v39 = vcombine.high %v1129_v14, %v1129_v14  ;;  %v1138_v15 = vcombine.high %v1136_v17, %v1136_v17  ;;  %v4232_v40 = vrot.slane %v1129_v14, %v4114_v58 }
 0x1d4   : > { %v4235_v42 = vrot.slane %v1136_v17, %v4114_v58  ;;  %v1073_v43 = vcombine.high %v4135_v18, %v4135_v18  ;;  %v1080_v52 = vrot.slane %v4135_v18, %v4114_v58  ;;  %v1174_v60 = vrot.slane %v4141_v21, %v4126_v12 }
 0x1d5   : > { %v4242_v41 = vrot.slane %v1137_v39, %v4114_v58  ;;  %v4245_v55 = vrot.slane %v1138_v15, %v4114_v58  ;;  %v1492_v63 = vadd.f32 %v1178_v62, %v4100_v45  ;;  %v4257_v14 = vrot.slane %v891_v3, %v4114_v58  ;;  %v4271_v15 = vld [vmem:[%s4948_s3] ss:$0 sm:$0xff] }
 0x1d6   : > { %v4262_v39 = vrot.slane %v971_v22, %v4126_v12  ;;  %v4265_v21 = vrot.slane %v892_v7, %v4114_v58  ;;  %v1087_v62 = vrot.slane %v1073_v43, %v4114_v58  ;;  %v4274_v2 = vrot.slane %v893_v38, %v4114_v58 }
 0x1d7   : > { %v1088_v3 = vcombine.high %v1080_v52, %v1080_v52  ;;  %v4277_v18 = vrot.slane %v1080_v52, %v4114_v58  ;;  %v1491_v22 = vadd.f32 %v1174_v60, %v4100_v45  ;;  %v1563_v43 = vadd.f32 %v4271_v15, %v1492_v63 }
 0x1d8   : > { %v1089_v4 = vcombine.high %v1087_v62, %v1087_v62  ;;  %v4281_v7 = vrot.slane %v1087_v62, %v4114_v58  ;;  %v1493_v17 = vadd.f32 %v1182_v1, %v4100_v45  ;;  %v922_v38 = vcombine.high %v4226_v31, %v4226_v31 }
 0x1d9   : > { %v4290_v32 = vrot.slane %v1088_v3, %v4114_v58  ;;  %v1562_v52 = vadd.f32 %v4271_v15, %v1491_v22  ;;  %v924_v62 = vcombine.high %v4265_v21, %v4265_v21  ;;  %v1627_v1 = vmax.f32 %v1563_v43, 0.0 }
 0x1da   : > { %v4298_v63 = vrot.slane %v1089_v4, %v4114_v58  ;;  %v1238_v27 = vrot.slane %v4226_v31, %v4126_v12  ;;  %v1242_v25 = vrot.slane %v4265_v21, %v4126_v12  ;;  %v1254_v3 = vrot.slane %v4257_v14, %v4126_v12 }
 0x1db   : > { %v1626_v22 = vmax.f32 %v1562_v52, 0.0  ;;  %v925_v60 = vcombine.high %v4274_v2, %v4274_v2  ;;  %v1564_v33 = vadd.f32 %v4271_v15, %v1493_v17  ;;  %v1186_v58 = vrot.slane %v826_v37, %v4126_v12 }
 0x1dc   : > { %v1495_v4 = vadd.f32 %v1190_v6, %v4100_v45  ;;  %v1194_v31 = vrot.slane %v4166_v34, %v4126_v12  ;;  %v1198_v43 = vrot.slane %v825_v36, %v4126_v12  ;;  %v1202_v17 = vrot.slane %v827_v61, %v4126_v12 }
 0x1dd   : > { %2986 = vmatprep.mubr.f32.mxu0 %v1626_v22  ;;  %v1499_v24 = vadd.f32 %v4098_v44, %v1206_v26  ;;  %v1246_v37 = vrot.slane %v922_v38, %v4126_v12  ;;  %v1628_v6 = vmax.f32 %v1564_v33, 0.0  ;;  %v1494_v52 = vadd.f32 %v1186_v58, %v4100_v45 }
 0x1de   : > { %2987 = vmatmul.mubr.f32.vlgmr.msra.gmra.mrb[0].mxu0 %v1627_v1  ;;  %v1500_v23 = vadd.f32 %v4098_v44, %v1210_v29  ;;  %v1566_v36 = vadd.f32 %v4271_v15, %v1495_v4  ;;  %v1496_v34 = vadd.f32 %v1194_v31, %v4100_v45  ;;  %v1497_v61 = vadd.f32 %v1198_v43, %v4100_v45 }
 0x1df   : > { %v1498_v5 = vadd.f32 %v1202_v17, %v4100_v45  ;;  %v1069_v26 = vcombine.high %v4178_v50, %v4178_v50  ;;  %2989 = vmatprep.mubr.f32.mxu0 %v1628_v6  ;;  %v1565_v38 = vadd.f32 %v4271_v15, %v1494_v52  ;;  %v1501_v29 = vadd.f32 %v4098_v44, %v4159_v30 }
 0x1e0   : > { %v1334_v45 = vrot.slane %v4178_v50, %v4126_v12  ;;  %v1567_v43 = vadd.f32 %v4271_v15, %v1496_v34  ;;  %v1218_v30 = vrot.slane %v875_v28, %v4126_v12  ;;  %v1020_v17 = vcombine.high %v4191_v59, %v4191_v59 }
 0x1e1   : > { %v1629_v31 = vmax.f32 %v1565_v38, 0.0  ;;  %v1630_v6 = vmax.f32 %v1566_v36, 0.0  ;;  %v1568_v52 = vadd.f32 %v4271_v15, %v1497_v61  ;;  %v4986_v22 = vrot.slane %v4124_v11, %v4126_v12 }
 0x1e2   : > { %v1570_v38 = vadd.f32 %v4271_v15, %v1499_v24  ;;  %v1502_v34 = vadd.f32 %v4098_v44, %v1218_v30  ;;  %v1226_v16 = vrot.slane %v4138_v19, %v4126_v12  ;;  %v4987_v28 = vcombine.high %v4124_v11, %v4124_v11 }
 0x1e3   : > { %v1503_v33 = vadd.f32 %v4098_v44, %v4986_v22  ;;  %2990 = vmatmul.mubr.f32.gmra.mrb[2].mxu0 %v1629_v31  ;;  %v1569_v61 = vadd.f32 %v4271_v15, %v1498_v5  ;;  %v4988_v22 = vcombine.high %v4138_v19, %v4138_v19  ;;  %v1507_v24 = vadd.f32 %v1238_v27, %v4104_v47 }
 0x1e4   : > { %v1230_v36 = vrot.slane %v4987_v28, %v4126_v12  ;;  %2992 = vmatprep.mubr.f32.mxu0 %v1630_v6  ;;  %v4382_v30 = vadd.f32 %v1242_v25, %v4104_v47  ;;  %v1631_v58 = vmax.f32 %v1567_v43, 0.0  ;;  %v1504_v1 = vadd.f32 %v4098_v44, %v1226_v16 }
 0x1e5   : > { %v1234_v31 = vrot.slane %v4988_v22, %v4126_v12  ;;  %v4387_v11 = vadd.f32 %v1246_v37, %v4104_v47  ;;  %v4390_v5 = vrot.slane %v1069_v26, %v4126_v12  ;;  %v1302_v19 = vrot.slane %v4191_v59, %v4126_v12 }
 0x1e6   : > { %v1505_v4 = vadd.f32 %v4098_v44, %v1230_v36  ;;  %v1632_v6 = vmax.f32 %v1568_v52, 0.0  ;;  %v1021_v25 = vcombine.high %v4205_v8, %v4205_v8  ;;  %v1022_v43 = vcombine.high %v4208_v9, %v4208_v9 }
 0x1e7   : > { %v1506_v27 = vadd.f32 %v4098_v44, %v1234_v31  ;;  %v1306_v16 = vrot.slane %v4208_v9, %v4126_v12  ;;  %v1310_v37 = vrot.slane %v1020_v17, %v4126_v12  ;;  %2993 = vmatmul.mubr.f32.gmra.mrb[4].mxu0 %v1631_v58  ;;  %v1023_v26 = vcombine.high %v4214_v13, %v4214_v13 }
 0x1e8   : > { %v1318_v59 = vrot.slane %v4205_v8, %v4126_v12  ;;  %v1167_v44 = vcombine.high %v4232_v40, %v4232_v40  ;;  %2995 = vmatprep.mubr.f32.mxu0 %v1632_v6  ;;  %v1250_v52 = vrot.slane %v924_v62, %v4126_v12  ;;  %v1633_v28 = vmax.f32 %v1569_v61, 0.0 }
 0x1e9   : > { %v1634_v36 = vmax.f32 %v1570_v38, 0.0  ;;  %v1571_v17 = vadd.f32 %v4271_v15, %v1500_v23  ;;  %v1511_v58 = vadd.f32 %v1254_v3, %v4104_v47  ;;  %v1572_v22 = vadd.f32 %v4271_v15, %v1501_v29 }
 0x1ea   : > { %v4419_v31 = vadd.f32 %v1250_v52, %v4104_v47  ;;  %v1258_v6 = vrot.slane %v4274_v2, %v4126_v12  ;;  %v4989_v21 = vcombine.high %v4257_v14, %v4257_v14  ;;  %v1574_v23 = vadd.f32 %v4271_v15, %v1503_v33 }
 0x1eb   : > { %2996 = vmatmul.mubr.f32.gmra.mrb[6].mxu0 %v1633_v28  ;;  %v1266_v3 = vrot.slane %v925_v60, %v4126_v12  ;;  %v4990_v29 = vrot.slane %v4198_v0, %v4126_v12  ;;  %v4991_v61 = vrot.slane %v4219_v20, %v4126_v12  ;;  %v1573_v33 = vadd.f32 %v4271_v15, %v1502_v34 }
 0x1ec   : > { %v1262_v62 = vrot.slane %v4989_v21, %v4126_v12  ;;  %2998 = vmatprep.mubr.f32.mxu0 %v1634_v36  ;;  %v4446_v52 = vadd.f32 %v1258_v6, %v4104_v47  ;;  %v4453_v0 = vadd.f32 %v4102_v46, %v4262_v39  ;;  %v1398_v28 = vrot.slane %v4232_v40, %v4126_v12 }
 0x1ed   : > { %v4436_v38 = vadd.f32 %v4102_v46, %v4990_v29  ;;  %v4442_v14 = vadd.f32 %v4102_v46, %v4991_v61  ;;  %v1635_v21 = vmax.f32 %v1571_v17, 0.0  ;;  %v4460_v36 = vadd.f32 %v1266_v3, %v4104_v47 }
 0x1ee   : > { %v4449_v2 = vadd.f32 %v1262_v62, %v4104_v47  ;;  %v1636_v62 = vmax.f32 %v1572_v22, 0.0  ;;  %v4471_v61 = vrot.slane %v1167_v44, %v4126_v12  ;;  %v1118_v47 = vcombine.high %v4277_v18, %v4277_v18 }
 0x1ef   : > { %2999 = vmatmul.mubr.f32.gmra.mrb[8].mxu0 %v1635_v21  ;;  %v4992_v17 = vcombine.high %v4219_v20, %v4219_v20  ;;  %v1637_v6 = vmax.f32 %v1573_v33, 0.0  ;;  %v1638_v60 = vmax.f32 %v1574_v23, 0.0  ;;  %v1578_v22 = vadd.f32 %v4271_v15, %v1507_v24 }
 0x1f0   : > { %3001 = vmatprep.mubr.f32.mxu0 %v1636_v62  ;;  %v4993_v39 = vrot.slane %v4211_v10, %v4126_v12  ;;  %v1575_v34 = vadd.f32 %v4271_v15, %v1504_v1  ;;  %v1290_v20 = vrot.slane %v4229_v35, %v4126_v12  ;;  %v4994_v23 = vcombine.high %v4211_v10, %v4211_v10 }
 0x1f1   : > { %v1282_v3 = vrot.slane %v4992_v17, %v4126_v12  ;;  %v1576_v24 = vadd.f32 %v4271_v15, %v1505_v4  ;;  %v1523_v1 = vadd.f32 %v1302_v19, %v4108_v49  ;;  %v1524_v17 = vadd.f32 %v1306_v16, %v4108_v49 }
 0x1f2   : > { %v4484_v44 = vadd.f32 %v4102_v46, %v4993_v39  ;;  %v1294_v33 = vrot.slane %v4994_v23, %v4126_v12  ;;  %v4995_v39 = vcombine.high %v4229_v35, %v4229_v35  ;;  %v4505_v29 = vadd.f32 %v4102_v46, %v1290_v20 }
 0x1f3   : > { %v4488_v21 = vadd.f32 %v4102_v46, %v1282_v3  ;;  %3002 = vmatmul.mubr.f32.gmra.mrb[10].mxu0 %v1637_v6  ;;  %v1577_v3 = vadd.f32 %v4271_v15, %v1506_v27  ;;  %v1525_v4 = vadd.f32 %v1310_v37, %v4108_v49  ;;  %v1366_v23 = vrot.slane %v4277_v18, %v4126_v12 }
 0x1f4   : > { %v1298_v62 = vrot.slane %v4995_v39, %v4126_v12  ;;  %v4508_v10 = vadd.f32 %v4102_v46, %v1294_v33  ;;  %3004 = vmatprep.mubr.f32.mxu0 %v1638_v60  ;;  %v4517_v19 = vadd.f32 %v4271_v15, %v1523_v1  ;;  %v4520_v27 = vadd.f32 %v4271_v15, %v1524_v17 }
 0x1f5   : > { %v1119_v16 = vcombine.high %v4281_v7, %v4281_v7  ;;  %v1382_v6 = vrot.slane %v4281_v7, %v4126_v12  ;;  %v1639_v37 = vmax.f32 %v1575_v34, 0.0  ;;  %v4527_v20 = vadd.f32 %v4271_v15, %v1525_v4 }
 0x1f6   : > { %v4514_v35 = vadd.f32 %v4102_v46, %v1298_v62  ;;  %v1640_v18 = vmax.f32 %v1576_v24, 0.0  ;;  %v1579_v46 = vadd.f32 %v4271_v15, %v4382_v30  ;;  %v1580_v60 = vadd.f32 %v4271_v15, %v4387_v11 }
 0x1f7   : > { %v1314_v33 = vrot.slane %v1022_v43, %v4126_v12  ;;  %3005 = vmatmul.mubr.f32.gmra.mrb[12].mxu0 %v1639_v37  ;;  %v1641_v39 = vmax.f32 %v1577_v3, 0.0  ;;  %v1642_v62 = vmax.f32 %v1578_v22, 0.0  ;;  %v1582_v34 = vadd.f32 %v4271_v15, %v1511_v58 }
 0x1f8   : > { %v1527_v24 = vadd.f32 %v1318_v59, %v4108_v49  ;;  %3007 = vmatprep.mubr.f32.mxu0 %v1640_v18  ;;  %v1581_v30 = vadd.f32 %v4271_v15, %v4419_v31  ;;  %v1322_v9 = vrot.slane %v4214_v13, %v4126_v12  ;;  %v1326_v43 = vrot.slane %v1021_v25, %v4126_v12 }
 0x1f9   : > { %v1526_v11 = vadd.f32 %v1314_v33, %v4108_v49  ;;  %v1330_v59 = vrot.slane %v1023_v26, %v4126_v12  ;;  %v1531_v31 = vadd.f32 %v4106_v48, %v1334_v45  ;;  %v4996_v22 = vrot.slane %v4185_v56, %v4126_v12 }
 0x1fa   : > { %v4552_v58 = vadd.f32 %v4271_v15, %v1527_v24  ;;  %v1528_v25 = vadd.f32 %v1322_v9, %v4108_v49  ;;  %v1529_v17 = vadd.f32 %v1326_v43, %v4108_v49  ;;  %v1533_v13 = vadd.f32 %v4106_v48, %v4390_v5 }
 0x1fb   : > { %v1532_v1 = vadd.f32 %v4106_v48, %v4996_v22  ;;  %v4567_v8 = vadd.f32 %v4271_v15, %v1526_v11  ;;  %v1120_v50 = vcombine.high %v4290_v32, %v4290_v32  ;;  %3008 = vmatmul.mubr.f32.gmra.mrb[14].mxu0 %v1641_v39  ;;  %v1530_v45 = vadd.f32 %v1330_v59, %v4108_v49 }
 0x1fc   : > { %v4577_v26 = vadd.f32 %v4271_v15, %v1531_v31  ;;  %v1370_v4 = vrot.slane %v4290_v32, %v4126_v12  ;;  %3010 = vmatprep.mubr.f32.mxu0 %v1642_v62  ;;  %v4585_v37 = vadd.f32 %v4271_v15, %v1528_v25  ;;  %v4588_v5 = vadd.f32 %v4271_v15, %v1529_v17 }
 0x1fd   : > { %v4580_v3 = vadd.f32 %v4271_v15, %v1532_v1  ;;  %v4591_v18 = vadd.f32 %v4271_v15, %v1533_v13  ;;  %v1374_v49 = vrot.slane %v1118_v47, %v4126_v12  ;;  %v1643_v33 = vmax.f32 %v1579_v46, 0.0 }
 0x1fe   : > { %v4595_v39 = vadd.f32 %v4271_v15, %v1530_v45  ;;  %v4997_v32 = vcombine.high %v4185_v56, %v4185_v56  ;;  %v1644_v24 = vmax.f32 %v1580_v60, 0.0  ;;  %v1645_v11 = vmax.f32 %v1581_v30, 0.0 }
 0x1ff   : > { %v1646_v9 = vmax.f32 %v1582_v34, 0.0  ;;  %v4998_v43 = vrot.slane %v4181_v51, %v4126_v12  ;;  %3011 = vmatmul.mubr.f32.gmra.mrb[16].mxu0 %v1643_v33  ;;  %v1583_v47 = vadd.f32 %v4271_v15, %v4446_v52  ;;  %v1354_v31 = vrot.slane %v4188_v57, %v4126_v12 }
 0x200   : > { %v1346_v62 = vrot.slane %v4997_v32, %v4126_v12  ;;  %v4999_v56 = vcombine.high %v4181_v51, %v4181_v51  ;;  %3013 = vmatprep.mubr.f32.mxu0 %v1644_v24  ;;  %v5000_v30 = vcombine.high %v4188_v57, %v4188_v57  ;;  %v1539_v52 = vadd.f32 %v1366_v23, %v4112_v54 }
 0x201   : > { %v1535_v59 = vadd.f32 %v4106_v48, %v4998_v43  ;;  %v1540_v1 = vadd.f32 %v1370_v4, %v4112_v54  ;;  %v1536_v17 = vadd.f32 %v4106_v48, %v1354_v31  ;;  %v1541_v13 = vadd.f32 %v1374_v49, %v4112_v54 }
 0x202   : > { %v1534_v46 = vadd.f32 %v4106_v48, %v1346_v62  ;;  %v1358_v60 = vrot.slane %v4999_v56, %v4126_v12  ;;  %v1362_v22 = vrot.slane %v5000_v30, %v4126_v12  ;;  %v1584_v45 = vadd.f32 %v4271_v15, %v4449_v2 }
 0x203   : > { %v4615_v34 = vadd.f32 %v4271_v15, %v1535_v59  ;;  %v4633_v57 = vadd.f32 %v4271_v15, %v1539_v52  ;;  %v4636_v23 = vadd.f32 %v4271_v15, %v1540_v1  ;;  %v1121_v4 = vcombine.high %v4298_v63, %v4298_v63  ;;  %3014 = vmatmul.mubr.f32.gmra.mrb[18].mxu0 %v1645_v11 }
 0x204   : > { %v4624_v25 = vadd.f32 %v4271_v15, %v1534_v46  ;;  %v1537_v51 = vadd.f32 %v4106_v48, %v1358_v60  ;;  %v1538_v33 = vadd.f32 %v4106_v48, %v1362_v22  ;;  %v4641_v32 = vadd.f32 %v4271_v15, %v1536_v17  ;;  %3016 = vmatprep.mubr.f32.mxu0 %v1646_v9 }
 0x205   : > { %v4647_v2 = vadd.f32 %v4271_v15, %v1541_v13  ;;  %v1586_v48 = vadd.f32 %v4271_v15, %v4436_v38  ;;  %v1587_v62 = vadd.f32 %v4271_v15, %v4442_v14  ;;  %v1378_v11 = vrot.slane %v1120_v50, %v4126_v12 }
 0x206   : > { %v4644_v49 = vadd.f32 %v4271_v15, %v1537_v51  ;;  %v4654_v24 = vadd.f32 %v4271_v15, %v1538_v33  ;;  %v1647_v43 = vmax.f32 %v1583_v47, 0.0  ;;  %v1585_v59 = vadd.f32 %v4271_v15, %v4460_v36 }
 0x207   : > { %v1588_v46 = vadd.f32 %v4271_v15, %v4453_v0  ;;  %v1543_v38 = vadd.f32 %v1382_v6, %v4112_v54  ;;  %v1648_v9 = vmax.f32 %v1584_v45, 0.0  ;;  %v1542_v14 = vadd.f32 %v1378_v11, %v4112_v54 }
 0x208   : > { %v1386_v31 = vrot.slane %v4298_v63, %v4126_v12  ;;  %v1390_v50 = vrot.slane %v1119_v16, %v4126_v12  ;;  %3017 = vmatmul.mubr.f32.gmra.mrb[20].mxu0 %v1647_v43  ;;  %v1394_v0 = vrot.slane %v1121_v4, %v4126_v12  ;;  %v1547_v6 = vadd.f32 %v4110_v53, %v1398_v28 }
 0x209   : > { %v4673_v36 = vadd.f32 %v4271_v15, %v1543_v38  ;;  %v5001_v47 = vrot.slane %v4242_v41, %v4126_v12  ;;  %3019 = vmatprep.mubr.f32.mxu0 %v1648_v9  ;;  %v4685_v7 = vadd.f32 %v4271_v15, %v1542_v14  ;;  %v1549_v60 = vadd.f32 %v4110_v53, %v4471_v61 }
 0x20a   : > { %v1544_v16 = vadd.f32 %v1386_v31, %v4112_v54  ;;  %v1545_v56 = vadd.f32 %v1390_v50, %v4112_v54  ;;  %v1649_v30 = vmax.f32 %v1585_v59, 0.0  ;;  %v1546_v40 = vadd.f32 %v1394_v0, %v4112_v54 }
 0x20b   : > { %v1548_v63 = vadd.f32 %v4110_v53, %v5001_v47  ;;  %v4693_v28 = vadd.f32 %v4271_v15, %v1547_v6  ;;  %v1650_v52 = vmax.f32 %v1586_v48, 0.0  ;;  %v4705_v51 = vadd.f32 %v4271_v15, %v1549_v60 }
 0x20c   : > { %v4699_v1 = vadd.f32 %v4271_v15, %v1544_v16  ;;  %v4702_v17 = vadd.f32 %v4271_v15, %v1545_v56  ;;  %3020 = vmatmul.mubr.f32.gmra.mrb[22].mxu0 %v1649_v30  ;;  %v4708_v61 = vadd.f32 %v4271_v15, %v1546_v40  ;;  %v5002_v54 = vcombine.high %v4242_v41, %v4242_v41 }
 0x20d   : > { %v4696_v22 = vadd.f32 %v4271_v15, %v1548_v63  ;;  %3022 = vmatprep.mubr.f32.mxu0 %v1650_v52  ;;  %v1651_v45 = vmax.f32 %v1587_v62, 0.0  ;;  %v5003_v33 = vrot.slane %v4235_v42, %v4126_v12  ;;  %v1589_v48 = vadd.f32 %v4271_v15, %v4488_v21 }
 0x20e   : > { %v1410_v13 = vrot.slane %v5002_v54, %v4126_v12  ;;  %v1418_v43 = vrot.slane %v4245_v55, %v4126_v12  ;;  %v5004_v41 = vcombine.high %v4235_v42, %v4235_v42  ;;  %v1652_v38 = vmax.f32 %v1588_v46, 0.0 }
 0x20f   : > { %v1551_v4 = vadd.f32 %v4110_v53, %v5003_v33  ;;  %v1590_v62 = vadd.f32 %v4271_v15, %v4484_v44  ;;  %v5005_v21 = vcombine.high %v4245_v55, %v4245_v55  ;;  %v1653_v44 = vmax.f32 %v1589_v48, 0.0  ;;  %v2266_v33 = vld [vmem:[#allocation10] sm:$0xff]  ;;  %v2268_v48 = vld [vmem:[#allocation10 + $0x10] sm:$0xff] }
 0x210   : > { %v1550_v11 = vadd.f32 %v4110_v53, %v1410_v13  ;;  %v1422_v59 = vrot.slane %v5004_v41, %v4126_v12  ;;  %3023 = vmatmul.mubr.f32.gmra.mrb[24].mxu0 %v1651_v45  ;;  %v1552_v50 = vadd.f32 %v4110_v53, %v1418_v43  ;;  %v1591_v0 = vadd.f32 %v4271_v15, %v4505_v29 }
 0x211   : > { %v4730_v9 = vadd.f32 %v4271_v15, %v1551_v4  ;;  %v1426_v14 = vrot.slane %v5005_v21, %v4126_v12  ;;  %3025 = vmatprep.mubr.f32.mxu0 %v1652_v38  ;;  %v1654_v55 = vmax.f32 %v1590_v62, 0.0  ;;  %v1592_v47 = vadd.f32 %v4271_v15, %v4508_v10  ;;  %v2267_v4 = vld [vmem:[#allocation10 + $0x8] sm:$0xff] }
 0x212   : > { %v4737_v31 = vadd.f32 %v4271_v15, %v1550_v11  ;;  %v1553_v42 = vadd.f32 %v4110_v53, %v1422_v59  ;;  %v4745_v6 = vadd.f32 %v4271_v15, %v1552_v50  ;;  %v1593_v16 = vadd.f32 %v4271_v15, %v4514_v35  ;;  %v2269_v59 = vld [vmem:[#allocation10 + $0x18] sm:$0xff] }
 0x213   : > { %v1554_v46 = vadd.f32 %v4110_v53, %v1426_v14  ;;  %v1655_v53 = vmax.f32 %v1591_v0, 0.0  ;;  %v1656_v29 = vmax.f32 %v1592_v47, 0.0  ;;  %v1658_v60 = vmax.f32 %v4517_v19, 0.0  ;;  %v2270_v14 = vld [vmem:[#allocation10 + $0x20] sm:$0xff] }
 0x214   : > { %v4748_v12 = vadd.f32 %v4271_v15, %v1553_v42  ;;  %3026 = vmatmul.mubr.f32.gmra.mrb[26].mxu0 %v1653_v44  ;;  %v1657_v56 = vmax.f32 %v1593_v16, 0.0  ;;  %v1659_v30 = vmax.f32 %v4520_v27, 0.0  ;;  %v1660_v10 = vmax.f32 %v4527_v20, 0.0 }
 0x215   : > { %v4753_v63 = vadd.f32 %v4271_v15, %v1554_v46  ;;  %3028 = vmatprep.mubr.f32.mxu0 %v1654_v55  ;;  %v1661_v40 = vmax.f32 %v4567_v8, 0.0  ;;  %v1662_v52 = vmax.f32 %v4552_v58, 0.0  ;;  %v1663_v15 = vmax.f32 %v4585_v37, 0.0 }
 0x216   : > { %v1664_v35 = vmax.f32 %v4588_v5, 0.0  ;;  %v1665_v19 = vmax.f32 %v4595_v39, 0.0  ;;  %v1666_v27 = vmax.f32 %v4577_v26, 0.0  ;;  %v1667_v20 = vmax.f32 %v4580_v3, 0.0 }
 0x217   : > { %v1668_v8 = vmax.f32 %v4591_v18, 0.0  ;;  %v1669_v58 = vmax.f32 %v4624_v25, 0.0  ;;  %v1670_v37 = vmax.f32 %v4615_v34, 0.0  ;;  %v1671_v5 = vmax.f32 %v4641_v32, 0.0 }
 0x218   : > { %3029 = vmatmul.mubr.f32.gmra.mrb[28].mxu0 %v1655_v53  ;;  %v1672_v39 = vmax.f32 %v4644_v49, 0.0  ;;  %v1673_v26 = vmax.f32 %v4654_v24, 0.0  ;;  %v1674_v3 = vmax.f32 %v4633_v57, 0.0  ;;  %v1675_v18 = vmax.f32 %v4636_v23, 0.0 }
 0x219   : > { %3031 = vmatprep.mubr.f32.mxu0 %v1656_v29  ;;  %v1676_v25 = vmax.f32 %v4647_v2, 0.0  ;;  %v1677_v34 = vmax.f32 %v4685_v7, 0.0  ;;  %v1678_v32 = vmax.f32 %v4673_v36, 0.0  ;;  %v1679_v49 = vmax.f32 %v4699_v1, 0.0 }
 0x21a   : > { %v1680_v24 = vmax.f32 %v4702_v17, 0.0  ;;  %v1681_v57 = vmax.f32 %v4708_v61, 0.0  ;;  %v1682_v23 = vmax.f32 %v4693_v28, 0.0  ;;  %v1683_v2 = vmax.f32 %v4696_v22, 0.0  ;;  %v4792_v22 = vld [vmem:[%s4950_s5] ss:$0 sm:$0xff] }
 0x21b   : > { %v1684_v7 = vmax.f32 %v4705_v51, 0.0  ;;  %v1685_v36 = vmax.f32 %v4737_v31, 0.0  ;;  %v1686_v1 = vmax.f32 %v4730_v9, 0.0  ;;  %v1687_v17 = vmax.f32 %v4745_v6, 0.0  ;;  %v2271_v31 = vld [vmem:[#allocation10 + $0x28] sm:$0xff] }
 0x21c   : > { %3032 = vmatmul.mubr.f32.gmra.mrb[30].mxu0 %v1657_v56  ;;  %v1688_v61 = vmax.f32 %v4748_v12, 0.0  ;;  %v1689_v28 = vmax.f32 %v4753_v63, 0.0  ;;  %v3708_v43 = vmov 0.0|0.0   ;;  %v3236_v41 = vpack.c.bf16 %v2267_v4, %v2266_v33 }
 0x21d   : > { %3034 = vmatprep.mubr.f32.mxu0 %v1658_v60  ;;  %3235 = vmatprep.subr.bf16.mxu1 %v3708_v43  ;;  %v3239_v62 = vpack.c.bf16 %v2269_v59, %v2268_v48  ;;  %v3242_v44 = vpack.c.bf16 %v2271_v31, %v2270_v14  ;;  %v2280_v59 = vld [vmem:[#allocation10 + $0x70] sm:$0xff] }
 0x21e   : > { %3237 = vmatpush3.bf16.msra.mxu1 %v3236_v41 }
 0x21f   : > { %3238 = vmatprep.subr.bf16.mxu1 %v3708_v43 }
 0x220   : > { %3035 = vmatmul.mubr.f32.gmra.mrb[32].mxu0 %v1659_v30 }
 0x221   : > { %3037 = vmatprep.mubr.f32.mxu0 %v1660_v10 }
 0x222   : > { %3240 = vmatpush3.bf16.msra.mxu1 %v3239_v62 }
 0x223   : > { %3241 = vmatprep.subr.bf16.mxu1 %v3708_v43 }
 0x224   : > { %3038 = vmatmul.mubr.f32.gmra.mrb[34].mxu0 %v1661_v40 }
 0x225   : > { %3040 = vmatprep.mubr.f32.mxu0 %v1662_v52 }
 0x226   : > { %3243 = vmatpush3.bf16.msra.mxu1 %v3242_v44 }
 0x227   : > { %3244 = vmatprep.subr.bf16.mxu1 %v3708_v43 }
 0x228   : > { %3041 = vmatmul.mubr.f32.gmra.mrb[36].mxu0 %v1663_v15  ;;  %v2272_v15 = vld [vmem:[#allocation10 + $0x30] sm:$0xff] }
 0x229   : > { %3043 = vmatprep.mubr.f32.mxu0 %v1664_v35  ;;  %v2273_v35 = vld [vmem:[#allocation10 + $0x38] sm:$0xff] }
 0x22c   : > { %3044 = vmatmul.mubr.f32.gmra.mrb[38].mxu0 %v1665_v19  ;;  %v2274_v19 = vld [vmem:[#allocation10 + $0x40] sm:$0xff] }
 0x22d   : > { %3046 = vmatprep.mubr.f32.mxu0 %v1666_v27  ;;  %v3245_v27 = vpack.c.bf16 %v2273_v35, %v2272_v15 }
 0x22f   : > { %3246 = vmatpush3.bf16.msra.mxu1 %v3245_v27 }
 0x230   : > { %3047 = vmatmul.mubr.f32.gmra.mrb[40].mxu0 %v1667_v20  ;;  %v2275_v20 = vld [vmem:[#allocation10 + $0x48] sm:$0xff]  ;;  %3247 = vmatprep.subr.bf16.mxu1 %v3708_v43 }
 0x231   : > { %3049 = vmatprep.mubr.f32.mxu0 %v1668_v8  ;;  %v3710_v8 = vmov 0.0  }
 0x232   : > { %3114 = vmatprep.mubr.msk.f32.mxu1 %vm3709_vm1, %v3710_v8 }
 0x234   : > { %3050 = vmatmul.mubr.f32.gmra.mrb[42].mxu0 %v1669_v58 }
 0x235   : > { %3052 = vmatprep.mubr.f32.mxu0 %v1670_v37 }
 0x238   : > { %3053 = vmatmul.mubr.f32.gmra.mrb[44].mxu0 %v1671_v5 }
 0x239   : > { %3055 = vmatprep.mubr.f32.mxu0 %v1672_v39 }
 0x23c   : > { %3056 = vmatmul.mubr.f32.gmra.mrb[46].mxu0 %v1673_v26 }
 0x23d   : > { %3058 = vmatprep.mubr.f32.mxu0 %v1674_v3  ;;  %v3248_v3 = vpack.c.bf16 %v2275_v20, %v2274_v19 }
 0x23f   : > { %3249 = vmatpush3.bf16.msra.mxu1 %v3248_v3 }
 0x240   : > { %3059 = vmatmul.mubr.f32.gmra.mrb[48].mxu0 %v1675_v18  ;;  %3250 = vmatprep.subr.bf16.mxu1 %v3708_v43 }
 0x241   : > { %3061 = vmatprep.mubr.f32.mxu0 %v1676_v25 }
 0x244   : > { %3062 = vmatmul.mubr.f32.gmra.mrb[50].mxu0 %v1677_v34 }
 0x245   : > { %3064 = vmatprep.mubr.f32.mxu0 %v1678_v32  ;;  %v2276_v32 = vld [vmem:[#allocation10 + $0x50] sm:$0xff] }
 0x248   : > { %3065 = vmatmul.mubr.f32.gmra.mrb[52].mxu0 %v1679_v49  ;;  %v2277_v49 = vld [vmem:[#allocation10 + $0x58] sm:$0xff] }
 0x249   : > { %3067 = vmatprep.mubr.f32.mxu0 %v1680_v24 }
 0x24c   : > { %3068 = vmatmul.mubr.f32.gmra.mrb[54].mxu0 %v1681_v57 }
 0x24d   : > { %3070 = vmatprep.mubr.f32.mxu0 %v1682_v23 }
 0x250   : > { %3071 = vmatmul.mubr.f32.gmra.mrb[56].mxu0 %v1683_v2 }
 0x251   : > { %3073 = vmatprep.mubr.f32.mxu0 %v1684_v7 }
 0x254   : > { %3074 = vmatmul.mubr.f32.gmra.mrb[58].mxu0 %v1685_v36  ;;  %v3251_v36 = vpack.c.bf16 %v2277_v49, %v2276_v32 }
 0x255   : > { %3076 = vmatprep.mubr.f32.mxu0 %v1686_v1 }
 0x256   : > { %3252 = vmatpush3.bf16.msra.mxu1 %v3251_v36 }
 0x257   : > { %3253 = vmatprep.subr.bf16.mxu1 %v3708_v43 }
 0x258   : > { %3077 = vmatmul.mubr.f32.gmra.mrb[60].mxu0 %v1687_v17 }
 0x259   : > { %3079 = vmatprep.mubr.f32.mxu0 %v1688_v61 }
 0x25c   : > { %3080 = vmatmul.mubr.f32.gmra.mrb[62].mxu0 %v1689_v28  ;;  %v2278_v28 = vld [vmem:[#allocation10 + $0x60] sm:$0xff] }
 0x2b1   : > { %v2988_v51 = vpop.f32.mrb[0].mxu0 }
 0x2b2   : > { %v1785_v54 = vadd.f32 %v2988_v51, %v4792_v22  ;;  %v1779_v13 = vpop.f32.mrb[1].mxu0  ;;  %v2279_v51 = vld [vmem:[#allocation10 + $0x68] sm:$0xff] }
 0x2b3   : > { %v1780_v45 = vadd.f32 %v4792_v22, %v1779_v13  ;;  %v3254_v33 = vpack.c.bf16 %v2279_v51, %v2278_v28 }
 0x2b4   : > { %v2099_v11 = vmax.f32 %v1785_v54, 0.0 }
 0x2b5   : > { %v2098_v38 = vmax.f32 %v1780_v45, 0.0  ;;  %3255 = vmatpush3.bf16.msra.mxu1 %v3254_v33 }
 0x2b6   : > { %v2991_v21 = vpop.f32.mrb[2].mxu0  ;;  %3256 = vmatprep.subr.bf16.mxu1 %v3708_v43 }
 0x2b7   : > { %v2162_v9 = vadd.f32 %v2099_v11, %v2098_v38  ;;  %v1789_v50 = vpop.f32.mrb[3].mxu0  ;;  %v1795_v42 = vadd.f32 %v2991_v21, %v4792_v22  ;;  %v2281_v38 = vld [vmem:[#allocation10 + $0x78] sm:$0xff] }
 0x2b8   : > { %v1790_v46 = vadd.f32 %v4792_v22, %v1789_v50  ;;  %v3257_v50 = vpack.c.bf16 %v2281_v38, %v2280_v59 }
 0x2b9   : > { %v2101_v47 = vmax.f32 %v1795_v42, 0.0 }
 0x2ba   : > { %v2100_v0 = vmax.f32 %v1790_v46, 0.0  ;;  %v2994_v6 = vpop.f32.mrb[4].mxu0  ;;  %3258 = vmatpush3.bf16.msra.mxu1 %v3257_v50 }
 0x2bb   : > { %v1805_v12 = vadd.f32 %v2994_v6, %v4792_v22  ;;  %v1799_v55 = vpop.f32.mrb[5].mxu0  ;;  %3259 = vmatprep.subr.bf16.mxu1 %v3708_v43 }
 0x2bc   : > { %v2163_v63 = vadd.f32 %v2162_v9, %v2100_v0  ;;  %v1800_v53 = vadd.f32 %v4792_v22, %v1799_v55 }
 0x2bd   : > { %v2103_v60 = vmax.f32 %v1805_v12, 0.0 }
 0x2be   : > { %v2102_v16 = vmax.f32 %v1800_v53, 0.0  ;;  %v2164_v29 = vadd.f32 %v2163_v63, %v2101_v47  ;;  %v2997_v56 = vpop.f32.mrb[6].mxu0 }
 0x2bf   : > { %v1815_v30 = vadd.f32 %v2997_v56, %v4792_v22  ;;  %v1809_v10 = vpop.f32.mrb[7].mxu0 }
 0x2c0   : > { %v2165_v40 = vadd.f32 %v2164_v29, %v2102_v16  ;;  %v1810_v52 = vadd.f32 %v4792_v22, %v1809_v10 }
 0x2c1   : > { %v2105_v18 = vmax.f32 %v1815_v30, 0.0 }
 0x2c2   : > { %v2104_v58 = vmax.f32 %v1810_v52, 0.0  ;;  %v2166_v37 = vadd.f32 %v2165_v40, %v2103_v60  ;;  %v3000_v5 = vpop.f32.mrb[8].mxu0 }
 0x2c3   : > { %v1825_v39 = vadd.f32 %v3000_v5, %v4792_v22  ;;  %v1819_v26 = vpop.f32.mrb[9].mxu0 }
 0x2c4   : > { %v2167_v25 = vadd.f32 %v2166_v37, %v2104_v58  ;;  %v1820_v34 = vadd.f32 %v4792_v22, %v1819_v26 }
 0x2c5   : > { %v2107_v24 = vmax.f32 %v1825_v39, 0.0 }
 0x2c6   : > { %v2168_v57 = vadd.f32 %v2167_v25, %v2105_v18  ;;  %v2106_v23 = vmax.f32 %v1820_v34, 0.0  ;;  %v3003_v2 = vpop.f32.mrb[10].mxu0 }
 0x2c7   : > { %v1829_v7 = vpop.f32.mrb[11].mxu0  ;;  %v1835_v17 = vadd.f32 %v3003_v2, %v4792_v22 }
 0x2c8   : > { %v2175_v1 = vadd.f32 %v2107_v24, %v2106_v23  ;;  %v1830_v61 = vadd.f32 %v4792_v22, %v1829_v7  ;;  %v2169_v62 = vrot.slane %v2168_v57, 4 }
 0x2c9   : > { %v2109_v4 = vmax.f32 %v1835_v17, 0.0 }
 0x2ca   : > { %v2108_v54 = vmax.f32 %v1830_v61, 0.0  ;;  %v3006_v13 = vpop.f32.mrb[12].mxu0  ;;  %v2170_v6 = vadd.f32 %v2169_v62, %v2168_v57 }
 0x2cb   : > { %v1839_v45 = vpop.f32.mrb[13].mxu0  ;;  %v1845_v11 = vadd.f32 %v3006_v13, %v4792_v22 }
 0x2cc   : > { %v2176_v48 = vadd.f32 %v2175_v1, %v2108_v54  ;;  %v1840_v41 = vadd.f32 %v4792_v22, %v1839_v45  ;;  %v2171_v30 = vrot.slane %v2170_v6, 2 }
 0x2cd   : > { %v2111_v42 = vmax.f32 %v1845_v11, 0.0 }
 0x2ce   : > { %v2110_v9 = vmax.f32 %v1840_v41, 0.0  ;;  %v2177_v21 = vadd.f32 %v2176_v48, %v2109_v4  ;;  %v3009_v14 = vpop.f32.mrb[14].mxu0  ;;  %v2172_v58 = vadd.f32 %v2171_v30, %v2170_v6 }
 0x2cf   : > { %v1849_v31 = vpop.f32.mrb[15].mxu0  ;;  %v1855_v44 = vadd.f32 %v3009_v14, %v4792_v22 }
 0x2d0   : > { %v2178_v46 = vadd.f32 %v2177_v21, %v2110_v9  ;;  %v1850_v0 = vadd.f32 %v4792_v22, %v1849_v31  ;;  %v2173_v49 = vrot.slane %v2172_v58, 1 }
 0x2d1   : > { %v2113_v16 = vmax.f32 %v1855_v44, 0.0 }
 0x2d2   : > { %v2112_v12 = vmax.f32 %v1850_v0, 0.0  ;;  %v2179_v55 = vadd.f32 %v2178_v46, %v2111_v42  ;;  %v3012_v47 = vpop.f32.mrb[16].mxu0  ;;  %v2174_v51 = vadd.f32 %v2173_v49, %v2172_v58 }
 0x2d3   : > { %v1865_v63 = vadd.f32 %v3012_v47, %v4792_v22  ;;  %v1859_v53 = vpop.f32.mrb[17].mxu0 }
 0x2d4   : > { %v2180_v29 = vadd.f32 %v2179_v55, %v2112_v12  ;;  %v1860_v56 = vadd.f32 %v4792_v22, %v1859_v53 }
 0x2d5   : > { %v2115_v60 = vmax.f32 %v1865_v63, 0.0 }
 0x2d6   : > { %v2181_v10 = vadd.f32 %v2180_v29, %v2113_v16  ;;  %v2114_v40 = vmax.f32 %v1860_v56, 0.0  ;;  %v3015_v52 = vpop.f32.mrb[18].mxu0 }
 0x2d7   : > { %v1869_v15 = vpop.f32.mrb[19].mxu0  ;;  %v1875_v27 = vadd.f32 %v3015_v52, %v4792_v22 }
 0x2d8   : > { %v2182_v35 = vrot.slane %v2181_v10, 4  ;;  %v2188_v19 = vadd.f32 %v2115_v60, %v2114_v40  ;;  %v1870_v20 = vadd.f32 %v4792_v22, %v1869_v15 }
 0x2d9   : > { %v2117_v25 = vmax.f32 %v1875_v27, 0.0 }
 0x2da   : > { %v2183_v37 = vadd.f32 %v2182_v35, %v2181_v10  ;;  %v2116_v5 = vmax.f32 %v1870_v20, 0.0 }
 0x2db   : > { %v3018_v39 = vpop.f32.mrb[20].mxu0 }
 0x2dc   : > { %v1885_v26 = vadd.f32 %v3018_v39, %v4792_v22  ;;  %v1879_v3 = vpop.f32.mrb[21].mxu0  ;;  %v2184_v18 = vrot.slane %v2183_v37, 2  ;;  %v2189_v34 = vadd.f32 %v2188_v19, %v2116_v5 }
 0x2dd   : > { %v1880_v32 = vadd.f32 %v4792_v22, %v1879_v3 }
 0x2de   : > { %v2185_v24 = vadd.f32 %v2184_v18, %v2183_v37  ;;  %v2190_v23 = vadd.f32 %v2189_v34, %v2117_v25  ;;  %v2119_v7 = vmax.f32 %v1885_v26, 0.0 }
 0x2df   : > { %v2118_v57 = vmax.f32 %v1880_v32, 0.0  ;;  %v3021_v2 = vpop.f32.mrb[22].mxu0 }
 0x2e0   : > { %v1889_v36 = vpop.f32.mrb[23].mxu0  ;;  %v2186_v1 = vrot.slane %v2185_v24, 1  ;;  %v1895_v61 = vadd.f32 %v3021_v2, %v4792_v22 }
 0x2e1   : > { %v2191_v17 = vadd.f32 %v2190_v23, %v2118_v57  ;;  %v1890_v28 = vadd.f32 %v4792_v22, %v1889_v36 }
 0x2e2   : > { %v2187_v54 = vadd.f32 %v2186_v1, %v2185_v24  ;;  %v2121_v41 = vmax.f32 %v1895_v61, 0.0 }
 0x2e3   : > { %v2120_v13 = vmax.f32 %v1890_v28, 0.0  ;;  %v2192_v45 = vadd.f32 %v2191_v17, %v2119_v7  ;;  %v3024_v33 = vpop.f32.mrb[24].mxu0 }
 0x2e4   : > { %v1905_v4 = vadd.f32 %v3024_v33, %v4792_v22  ;;  %v1899_v48 = vpop.f32.mrb[25].mxu0  ;;  %v2298_v11 = vsel %vm2297_vm2, %v2187_v54, %v2174_v51 }
 0x2e5   : > { %v2193_v59 = vadd.f32 %v2192_v45, %v2120_v13  ;;  %v1900_v38 = vadd.f32 %v4792_v22, %v1899_v48 }
 0x2e6   : > { %v2123_v62 = vmax.f32 %v1905_v4, 0.0 }
 0x2e7   : > { %v2194_v9 = vadd.f32 %v2193_v59, %v2121_v41  ;;  %v2122_v21 = vmax.f32 %v1900_v38, 0.0  ;;  %v3027_v14 = vpop.f32.mrb[26].mxu0 }
 0x2e8   : > { %v1909_v31 = vpop.f32.mrb[27].mxu0  ;;  %v1915_v46 = vadd.f32 %v3027_v14, %v4792_v22 }
 0x2e9   : > { %v2195_v50 = vrot.slane %v2194_v9, 4  ;;  %v2201_v42 = vadd.f32 %v2123_v62, %v2122_v21  ;;  %v1910_v44 = vadd.f32 %v4792_v22, %v1909_v31 }
 0x2ea   : > { %v2125_v53 = vmax.f32 %v1915_v46, 0.0 }
 0x2eb   : > { %v2196_v0 = vadd.f32 %v2195_v50, %v2194_v9  ;;  %v2124_v6 = vmax.f32 %v1910_v44, 0.0  ;;  %v3030_v12 = vpop.f32.mrb[28].mxu0 }
 0x2ec   : > { %v1925_v55 = vadd.f32 %v3030_v12, %v4792_v22  ;;  %v1919_v47 = vpop.f32.mrb[29].mxu0 }
 0x2ed   : > { %v2197_v63 = vrot.slane %v2196_v0, 2  ;;  %v2202_v16 = vadd.f32 %v2201_v42, %v2124_v6  ;;  %v1920_v29 = vadd.f32 %v4792_v22, %v1919_v47 }
 0x2ee   : > { %v2127_v40 = vmax.f32 %v1925_v55, 0.0 }
 0x2ef   : > { %v2198_v56 = vadd.f32 %v2197_v63, %v2196_v0  ;;  %v2126_v60 = vmax.f32 %v1920_v29, 0.0  ;;  %v2203_v30 = vadd.f32 %v2202_v16, %v2125_v53  ;;  %v3033_v10 = vpop.f32.mrb[30].mxu0 }
 0x2f0   : > { %v1929_v52 = vpop.f32.mrb[31].mxu0  ;;  %v1935_v19 = vadd.f32 %v3033_v10, %v4792_v22 }
 0x2f1   : > { %v2199_v15 = vrot.slane %v2198_v56, 1  ;;  %v2204_v35 = vadd.f32 %v2203_v30, %v2126_v60  ;;  %v1930_v27 = vadd.f32 %v4792_v22, %v1929_v52 }
 0x2f2   : > { %v2129_v18 = vmax.f32 %v1935_v19, 0.0 }
 0x2f3   : > { %v2200_v20 = vadd.f32 %v2199_v15, %v2198_v56  ;;  %v2128_v58 = vmax.f32 %v1930_v27, 0.0  ;;  %v2205_v37 = vadd.f32 %v2204_v35, %v2127_v40  ;;  %v3036_v5 = vpop.f32.mrb[32].mxu0 }
 0x2f4   : > { %v1945_v39 = vadd.f32 %v3036_v5, %v4792_v22  ;;  %v1939_v26 = vpop.f32.mrb[33].mxu0 }
 0x2f5   : > { %v2300_v3 = vsel %vm2299_vm3, %v2200_v20, %v2298_v11  ;;  %v2206_v25 = vadd.f32 %v2205_v37, %v2128_v58  ;;  %v1940_v34 = vadd.f32 %v4792_v22, %v1939_v26 }
 0x2f6   : > { %v2131_v32 = vmax.f32 %v1945_v39, 0.0 }
 0x2f7   : > { %v2207_v49 = vadd.f32 %v2206_v25, %v2129_v18  ;;  %v2130_v24 = vmax.f32 %v1940_v34, 0.0  ;;  %v3039_v57 = vpop.f32.mrb[34].mxu0 }
 0x2f8   : > { %v1949_v23 = vpop.f32.mrb[35].mxu0  ;;  %v1955_v36 = vadd.f32 %v3039_v57, %v4792_v22 }
 0x2f9   : > { %v2208_v2 = vrot.slane %v2207_v49, 4  ;;  %v2214_v7 = vadd.f32 %v2131_v32, %v2130_v24  ;;  %v1950_v1 = vadd.f32 %v4792_v22, %v1949_v23 }
 0x2fa   : > { %v2133_v45 = vmax.f32 %v1955_v36, 0.0 }
 0x2fb   : > { %v2209_v17 = vadd.f32 %v2208_v2, %v2207_v49  ;;  %v2132_v61 = vmax.f32 %v1950_v1, 0.0  ;;  %v3042_v28 = vpop.f32.mrb[36].mxu0 }
 0x2fc   : > { %v1965_v51 = vadd.f32 %v3042_v28, %v4792_v22  ;;  %v1959_v54 = vpop.f32.mrb[37].mxu0 }
 0x2fd   : > { %v2210_v13 = vrot.slane %v2209_v17, 2  ;;  %v2215_v33 = vadd.f32 %v2214_v7, %v2132_v61  ;;  %v1960_v4 = vadd.f32 %v4792_v22, %v1959_v54 }
 0x2fe   : > { %v2135_v38 = vmax.f32 %v1965_v51, 0.0 }
 0x2ff   : > { %v2211_v48 = vadd.f32 %v2210_v13, %v2209_v17  ;;  %v2134_v11 = vmax.f32 %v1960_v4, 0.0  ;;  %v2216_v41 = vadd.f32 %v2215_v33, %v2133_v45  ;;  %v3045_v59 = vpop.f32.mrb[38].mxu0 }
 0x300   : > { %v1969_v62 = vpop.f32.mrb[39].mxu0  ;;  %v1975_v14 = vadd.f32 %v3045_v59, %v4792_v22 }
 0x301   : > { %v2212_v9 = vrot.slane %v2211_v48, 1  ;;  %v2217_v21 = vadd.f32 %v2216_v41, %v2134_v11  ;;  %v1970_v31 = vadd.f32 %v4792_v22, %v1969_v62 }
 0x302   : > { %v2137_v12 = vmax.f32 %v1975_v14, 0.0 }
 0x303   : > { %v2213_v50 = vadd.f32 %v2212_v9, %v2211_v48  ;;  %v2136_v42 = vmax.f32 %v1970_v31, 0.0  ;;  %v2218_v46 = vadd.f32 %v2217_v21, %v2135_v38  ;;  %v3048_v44 = vpop.f32.mrb[40].mxu0 }
 0x304   : > { %v1985_v0 = vadd.f32 %v3048_v44, %v4792_v22  ;;  %v1979_v6 = vpop.f32.mrb[41].mxu0 }
 0x305   : > { %v2219_v55 = vadd.f32 %v2218_v46, %v2136_v42  ;;  %v1980_v47 = vadd.f32 %v4792_v22, %v1979_v6  ;;  %v2302_v63 = vsel %vm2301_vm4, %v2213_v50, %v2300_v3 }
 0x306   : > { %v2139_v53 = vmax.f32 %v1985_v0, 0.0 }
 0x307   : > { %v2220_v16 = vadd.f32 %v2219_v55, %v2137_v12  ;;  %v2138_v29 = vmax.f32 %v1980_v47, 0.0  ;;  %v3051_v56 = vpop.f32.mrb[42].mxu0 }
 0x308   : > { %v1989_v60 = vpop.f32.mrb[43].mxu0  ;;  %v1995_v40 = vadd.f32 %v3051_v56, %v4792_v22 }
 0x309   : > { %v2221_v30 = vrot.slane %v2220_v16, 4  ;;  %v2227_v10 = vadd.f32 %v2139_v53, %v2138_v29  ;;  %v1990_v52 = vadd.f32 %v4792_v22, %v1989_v60 }
 0x30a   : > { %v2141_v37 = vmax.f32 %v1995_v40, 0.0 }
 0x30b   : > { %v2222_v15 = vadd.f32 %v2221_v30, %v2220_v16  ;;  %v2140_v35 = vmax.f32 %v1990_v52, 0.0  ;;  %v3054_v19 = vpop.f32.mrb[44].mxu0 }
 0x30c   : > { %v2005_v27 = vadd.f32 %v3054_v19, %v4792_v22  ;;  %v1999_v20 = vpop.f32.mrb[45].mxu0 }
 0x30d   : > { %v2223_v58 = vrot.slane %v2222_v15, 2  ;;  %v2228_v5 = vadd.f32 %v2227_v10, %v2140_v35  ;;  %v2000_v39 = vadd.f32 %v4792_v22, %v1999_v20 }
 0x30e   : > { %v2143_v34 = vmax.f32 %v2005_v27, 0.0 }
 0x30f   : > { %v2224_v26 = vadd.f32 %v2223_v58, %v2222_v15  ;;  %v2142_v3 = vmax.f32 %v2000_v39, 0.0  ;;  %v2229_v18 = vadd.f32 %v2228_v5, %v2141_v37  ;;  %v3057_v25 = vpop.f32.mrb[46].mxu0 }
 0x310   : > { %v2009_v32 = vpop.f32.mrb[47].mxu0  ;;  %v2015_v57 = vadd.f32 %v3057_v25, %v4792_v22 }
 0x311   : > { %v2225_v49 = vrot.slane %v2224_v26, 1  ;;  %v2230_v24 = vadd.f32 %v2229_v18, %v2142_v3  ;;  %v2010_v23 = vadd.f32 %v4792_v22, %v2009_v32 }
 0x312   : > { %v2145_v28 = vmax.f32 %v2015_v57, 0.0 }
 0x313   : > { %v2226_v2 = vadd.f32 %v2225_v49, %v2224_v26  ;;  %v2144_v7 = vmax.f32 %v2010_v23, 0.0  ;;  %v2231_v36 = vadd.f32 %v2230_v24, %v2143_v34  ;;  %v3060_v1 = vpop.f32.mrb[48].mxu0 }
 0x314   : > { %v2025_v17 = vadd.f32 %v3060_v1, %v4792_v22  ;;  %v2019_v61 = vpop.f32.mrb[49].mxu0 }
 0x315   : > { %v2232_v51 = vadd.f32 %v2231_v36, %v2144_v7  ;;  %v2020_v54 = vadd.f32 %v4792_v22, %v2019_v61  ;;  %v2304_v13 = vsel %vm2303_vm5, %v2226_v2, %v2302_v63 }
 0x316   : > { %v2147_v45 = vmax.f32 %v2025_v17, 0.0 }
 0x317   : > { %v2233_v33 = vadd.f32 %v2232_v51, %v2145_v28  ;;  %v2146_v4 = vmax.f32 %v2020_v54, 0.0  ;;  %v3063_v48 = vpop.f32.mrb[50].mxu0 }
 0x318   : > { %v2029_v11 = vpop.f32.mrb[51].mxu0  ;;  %v2035_v38 = vadd.f32 %v3063_v48, %v4792_v22 }
 0x319   : > { %v2234_v41 = vrot.slane %v2233_v33, 4  ;;  %v2240_v59 = vadd.f32 %v2147_v45, %v2146_v4  ;;  %v2030_v62 = vadd.f32 %v4792_v22, %v2029_v11 }
 0x31a   : > { %v2149_v46 = vmax.f32 %v2035_v38, 0.0 }
 0x31b   : > { %v2235_v9 = vadd.f32 %v2234_v41, %v2233_v33  ;;  %v2148_v21 = vmax.f32 %v2030_v62, 0.0  ;;  %v3066_v14 = vpop.f32.mrb[52].mxu0 }
 0x31c   : > { %v2045_v31 = vadd.f32 %v3066_v14, %v4792_v22  ;;  %v2039_v50 = vpop.f32.mrb[53].mxu0 }
 0x31d   : > { %v2236_v42 = vrot.slane %v2235_v9, 2  ;;  %v2241_v44 = vadd.f32 %v2240_v59, %v2148_v21  ;;  %v2040_v0 = vadd.f32 %v4792_v22, %v2039_v50 }
 0x31e   : > { %v2151_v63 = vmax.f32 %v2045_v31, 0.0 }
 0x31f   : > { %v2237_v6 = vadd.f32 %v2236_v42, %v2235_v9  ;;  %v2150_v12 = vmax.f32 %v2040_v0, 0.0  ;;  %v2242_v55 = vadd.f32 %v2241_v44, %v2149_v46  ;;  %v3069_v47 = vpop.f32.mrb[54].mxu0  ;;  %v2383_v44 = vld [vmem:[#allocation11] sm:$0xff]  ;;  %v2384_v0 = vld [vmem:[#allocation11 + $0x8] sm:$0xff] }
 0x320   : > { %v2049_v53 = vpop.f32.mrb[55].mxu0  ;;  %v2055_v56 = vadd.f32 %v3069_v47, %v4792_v22  ;;  %v2385_v47 = vld [vmem:[#allocation11 + $0x10] sm:$0xff] }
 0x321   : > { %v2238_v16 = vrot.slane %v2237_v6, 1  ;;  %v2243_v29 = vadd.f32 %v2242_v55, %v2150_v12  ;;  %v2050_v60 = vadd.f32 %v4792_v22, %v2049_v53  ;;  %v3260_v55 = vpack.c.bf16 %v2384_v0, %v2383_v44 }
 0x322   : > { %v2153_v19 = vmax.f32 %v2055_v56, 0.0 }
 0x323   : > { %v2239_v30 = vadd.f32 %v2238_v16, %v2237_v6  ;;  %v2152_v10 = vmax.f32 %v2050_v60, 0.0  ;;  %v2244_v40 = vadd.f32 %v2243_v29, %v2151_v63  ;;  %v3072_v52 = vpop.f32.mrb[56].mxu0  ;;  %v2387_v16 = vld [vmem:[#allocation11 + $0x20] sm:$0xff]  ;;  %v2388_v29 = vld [vmem:[#allocation11 + $0x28] sm:$0xff]  ;;  %v2389_v60 = vld [vmem:[#allocation11 + $0x30] sm:$0xff] }
 0x324   : > { %v2065_v15 = vadd.f32 %v3072_v52, %v4792_v22  ;;  %v2059_v35 = vpop.f32.mrb[57].mxu0  ;;  %v3266_v56 = vpack.c.bf16 %v2388_v29, %v2387_v16  ;;  %v2392_v52 = vld [vmem:[#allocation11 + $0x48] sm:$0xff] }
 0x325   : > { %v2245_v27 = vadd.f32 %v2244_v40, %v2152_v10  ;;  %v2060_v20 = vadd.f32 %v4792_v22, %v2059_v35  ;;  %v2306_v58 = vsel %vm2305_vm6, %v2239_v30, %v2304_v13  ;;  %v2390_v30 = vld [vmem:[#allocation11 + $0x38] sm:$0xff]  ;;  %v2391_v40 = vld [vmem:[#allocation11 + $0x40] sm:$0xff]  ;;  %v2393_v35 = vld [vmem:[#allocation11 + $0x50] sm:$0xff] }
 0x326   : > { %v2155_v37 = vmax.f32 %v2065_v15, 0.0  ;;  %v3269_v10 = vpack.c.bf16 %v2390_v30, %v2389_v60  ;;  %v3272_v15 = vpack.c.bf16 %v2392_v52, %v2391_v40 }
 0x327   : > { %v2246_v5 = vadd.f32 %v2245_v27, %v2153_v19  ;;  %v2154_v39 = vmax.f32 %v2060_v20, 0.0  ;;  %v3075_v26 = vpop.f32.mrb[58].mxu0  ;;  %v2394_v19 = vld [vmem:[#allocation11 + $0x58] sm:$0xff]  ;;  %v2395_v20 = vld [vmem:[#allocation11 + $0x60] sm:$0xff] }
 0x328   : > { %v2069_v3 = vpop.f32.mrb[59].mxu0  ;;  %v2075_v34 = vadd.f32 %v3075_v26, %v4792_v22  ;;  %v3275_v27 = vpack.c.bf16 %v2394_v19, %v2393_v35 }
 0x329   : > { %v2247_v18 = vrot.slane %v2246_v5, 4  ;;  %v2253_v25 = vadd.f32 %v2155_v37, %v2154_v39  ;;  %v2070_v32 = vadd.f32 %v4792_v22, %v2069_v3  ;;  %v2398_v39 = vld [vmem:[#allocation11 + $0x78] sm:$0xff]  ;;  %v2751_v3 = vld [vmem:[%s5006_s1] ss:$0 sm:$0xff]  ;;  %s5009_s1 = sld [smem:[#allocation24_spill]] }
 0x32a   : > { %v2157_v36 = vmax.f32 %v2075_v34, 0.0 }
 0x32b   : > { %v2248_v49 = vadd.f32 %v2247_v18, %v2246_v5  ;;  %v2156_v24 = vmax.f32 %v2070_v32, 0.0  ;;  %v3078_v57 = vpop.f32.mrb[60].mxu0  ;;  %v2397_v5 = vld [vmem:[#allocation11 + $0x70] sm:$0xff]  ;;  %v2477_v18 = vld [vmem:[#allocation13] sm:$0xff] }
 0x32c   : > { %v2085_v23 = vadd.f32 %v3078_v57, %v4792_v22  ;;  %v2079_v2 = vpop.f32.mrb[61].mxu0  ;;  %v3281_v26 = vpack.c.bf16 %v2398_v39, %v2397_v5 }
 0x32d   : > { %v2249_v7 = vrot.slane %v2248_v49, 2  ;;  %v2254_v1 = vadd.f32 %v2253_v25, %v2156_v24  ;;  %v2080_v17 = vadd.f32 %v4792_v22, %v2079_v2  ;;  %v2478_v25 = vld [vmem:[#allocation13 + $0x8] sm:$0xff]  ;;  %v2480_v2 = vld [vmem:[#allocation13 + $0x18] sm:$0xff] }
 0x32e   : > { %v2159_v13 = vmax.f32 %v2085_v23, 0.0  ;;  %v3284_v24 = vpack.c.bf16 %v2478_v25, %v2477_v18  ;;  %v2479_v23 = vld [vmem:[#allocation13 + $0x10] sm:$0xff] }
 0x32f   : > { %v2250_v61 = vadd.f32 %v2249_v7, %v2248_v49  ;;  %v2158_v28 = vmax.f32 %v2080_v17, 0.0  ;;  %v2255_v51 = vadd.f32 %v2254_v1, %v2157_v36  ;;  %v3081_v54 = vpop.f32.mrb[62].mxu0  ;;  %v3287_v7 = vpack.c.bf16 %v2480_v2, %v2479_v23  ;;  %v2481_v36 = vld [vmem:[#allocation13 + $0x20] sm:$0xff]  ;;  %v2482_v1 = vld [vmem:[#allocation13 + $0x28] sm:$0xff]  ;;  %s4902_s30 = scalar_lea.hbm %s5009_s1, %s2755_s17 }
 0x330   : > { %v2089_v45 = vpop.f32.mrb[63].mxu0  ;;  %v2095_v48 = vadd.f32 %v3081_v54, %v4792_v22  ;;  %v3290_v17 = vpack.c.bf16 %v2482_v1, %v2481_v36  ;;  %v2485_v54 = vld [vmem:[#allocation13 + $0x40] sm:$0xff] }
 0x331   : > { %v2251_v33 = vrot.slane %v2250_v61, 1  ;;  %v2256_v4 = vadd.f32 %v2255_v51, %v2158_v28  ;;  %v2090_v11 = vadd.f32 %v4792_v22, %v2089_v45  ;;  %v2386_v22 = vld [vmem:[#allocation11 + $0x18] sm:$0xff] }
 0x332   : > { %v2161_v62 = vmax.f32 %v2095_v48, 0.0  ;;  %v3263_v53 = vpack.c.bf16 %v2386_v22, %v2385_v47  ;;  %v2484_v28 = vld [vmem:[#allocation13 + $0x38] sm:$0xff]  ;;  %v2489_v48 = vld [vmem:[#allocation13 + $0x60] sm:$0xff] }
 0x333   : > { %v2252_v41 = vadd.f32 %v2251_v33, %v2250_v61  ;;  %v2160_v59 = vmax.f32 %v2090_v11, 0.0  ;;  %v2257_v38 = vadd.f32 %v2256_v4, %v2159_v13  ;;  %v2483_v61 = vld [vmem:[#allocation13 + $0x30] sm:$0xff]  ;;  %v2486_v13 = vld [vmem:[#allocation13 + $0x48] sm:$0xff]  ;;  %v2488_v33 = vld [vmem:[#allocation13 + $0x58] sm:$0xff] }
 0x334   : > { %v3293_v51 = vpack.c.bf16 %v2484_v28, %v2483_v61  ;;  %v3296_v45 = vpack.c.bf16 %v2486_v13, %v2485_v54  ;;  %v2490_v11 = vld [vmem:[#allocation13 + $0x68] sm:$0xff] }
 0x335   : > { %v2258_v9 = vadd.f32 %v2257_v38, %v2160_v59  ;;  %v2308_v21 = vsel %vm2307_vm7, %v2252_v41, %v2306_v58  ;;  %v2396_v58 = vld [vmem:[#allocation11 + $0x68] sm:$0xff]  ;;  %v3302_v41 = vpack.c.bf16 %v2490_v11, %v2489_v48  ;;  %v2491_v59 = vld [vmem:[#allocation13 + $0x70] sm:$0xff]  ;;  %v2492_v38 = vld [vmem:[#allocation13 + $0x78] sm:$0xff] }
 0x336   : > { %v3278_v37 = vpack.c.bf16 %v2396_v58, %v2395_v20 }
 0x337   : > { %v2259_v14 = vadd.f32 %v2258_v9, %v2161_v62  ;;  %v3305_v62 = vpack.c.bf16 %v2492_v38, %v2491_v59  ;;  %v2752_v9 = vld [vmem:[%s5007_s19] ss:$0 sm:$0xff]  ;;  %s3618_s19 = scalar_lea.vmem %s4904_s7, 128 }
 0x338   : > { %p3619_p5 = scmp.ne.s32.totalorder %s4904_s7, %s3618_s19  ;;  %p3626_p0 = scmp.lt.s32.totalorder %s3624_s20, %s3618_s19 }
 0x339   : > { %v2260_v31 = vrot.slane %v2259_v14, 4 }
 0x33a   : > { %p3620_p12 = pnand %p3619_p5, %p5010_p8  ;;  %p3627_p2 = por %p3626_p0, %p3625_p13 }
 0x33b   : > { %v2261_v50 = vadd.f32 %v2260_v31, %v2259_v14 }
 0x33c   : > { %p3621_p1 = pneg %p3620_p12 }
 0x33d   : > { %v2262_v42 = vrot.slane %v2261_v50, 2 }
 0x33e   : > { %p3628_p7 = pnand %p3627_p2, %p3621_p1 }
 0x33f   : > { %v2263_v46 = vadd.f32 %v2262_v42, %v2261_v50 }
 0x341   : > { %v2264_v6 = vrot.slane %v2263_v46, 1 }
 0x343   : > { %v2265_v12 = vadd.f32 %v2264_v6, %v2263_v46 }
 0x345   : > { %v2310_v63 = vsel %vm2309_vm8, %v2265_v12, %v2308_v21 }
 0x346   : > { %3115 = vmatmul.mubr.f32.vlgmr.msra.gmra.mrb[16].mxu1 %v2310_v63 }
 0x347   : > { %3261 = vmatpush3.bf16.msra.mxu1 %v3260_v55  ;;  %3149 = vmatprep.mubr.msk.f32.mxu1 %vm3709_vm1, %v3710_v8 }
 0x348   : > { %3262 = vmatprep.subr.bf16.mxu1 %v3708_v43 }
 0x34b   : > { %3264 = vmatpush3.bf16.msra.mxu1 %v3263_v53 }
 0x34c   : > { %3265 = vmatprep.subr.bf16.mxu1 %v3708_v43 }
 0x34f   : > { %3267 = vmatpush3.bf16.msra.mxu1 %v3266_v56 }
 0x350   : > { %3268 = vmatprep.subr.bf16.mxu1 %v3708_v43 }
 0x353   : > { %3270 = vmatpush3.bf16.msra.mxu1 %v3269_v10 }
 0x354   : > { %3271 = vmatprep.subr.bf16.mxu1 %v3708_v43 }
 0x357   : > { %3273 = vmatpush3.bf16.msra.mxu1 %v3272_v15 }
 0x358   : > { %3274 = vmatprep.subr.bf16.mxu1 %v3708_v43 }
 0x35b   : > { %3276 = vmatpush3.bf16.msra.mxu1 %v3275_v27 }
 0x35c   : > { %3277 = vmatprep.subr.bf16.mxu1 %v3708_v43 }
 0x35f   : > { %3279 = vmatpush3.bf16.msra.mxu1 %v3278_v37 }
 0x360   : > { %3280 = vmatprep.subr.bf16.mxu1 %v3708_v43 }
 0x363   : > { %3282 = vmatpush3.bf16.msra.mxu1 %v3281_v26 }
 0x364   : > { %3283 = vmatprep.subr.bf16.mxu1 %v3708_v43 }
 0x419   : > { %v2378_v34 = vpop.f32.mrb[16].mxu1 }
 0x41a   : > { %v2379_v32 = vadd.f32 %v2751_v3, %v2378_v34  ;;  %v3116_v49 = vpop.f32.mrb[17].mxu1 }
 0x41c   : > { %v2382_v57 = vmax.f32 %v2379_v32, 0.0 }
 0x41e   : > { %3150 = vmatmul.mubr.f32.vlgmr.msra.gmra.mrb[18].mxu1 %v2382_v57 }
 0x41f   : > { %3285 = vmatpush3.bf16.msra.mxu1 %v3284_v24  ;;  %3184 = vmatprep.mubr.msk.f32.mxu1 %vm3709_vm1, %v3710_v8  ;;  %v2487_v8 = vld [vmem:[#allocation13 + $0x50] sm:$0xff] }
 0x420   : > { %3286 = vmatprep.subr.bf16.mxu1 %v3708_v43  ;;  %v3299_v4 = vpack.c.bf16 %v2488_v33, %v2487_v8 }
 0x423   : > { %3288 = vmatpush3.bf16.msra.mxu1 %v3287_v7 }
 0x424   : > { %3289 = vmatprep.subr.bf16.mxu1 %v3708_v43 }
 0x427   : > { %3291 = vmatpush3.bf16.msra.mxu1 %v3290_v17 }
 0x428   : > { %3292 = vmatprep.subr.bf16.mxu1 %v3708_v43 }
 0x42b   : > { %3294 = vmatpush3.bf16.msra.mxu1 %v3293_v51 }
 0x42c   : > { %3295 = vmatprep.subr.bf16.mxu1 %v3708_v43 }
 0x42f   : > { %3297 = vmatpush3.bf16.msra.mxu1 %v3296_v45 }
 0x430   : > { %3298 = vmatprep.subr.bf16.mxu1 %v3708_v43 }
 0x433   : > { %3300 = vmatpush3.bf16.msra.mxu1 %v3299_v4 }
 0x434   : > { %3301 = vmatprep.subr.bf16.mxu1 %v3708_v43 }
 0x437   : > { %3303 = vmatpush3.bf16.msra.mxu1 %v3302_v41 }
 0x438   : > { %3304 = vmatprep.subr.bf16.mxu1 %v3708_v43  ;;  %v2753_v43 = vld [vmem:[%s5008_s28] ss:$0 sm:$0xff] }
 0x43b   : > { %3306 = vmatpush3.bf16.msra.mxu1 %v3305_v62 }
 0x4f1   : > { %v2472_v21 = vpop.f32.mrb[18].mxu1 }
 0x4f2   : > { %v2473_v14 = vadd.f32 %v2752_v9, %v2472_v21  ;;  %v3151_v31 = vpop.f32.mrb[19].mxu1 }
 0x4f4   : > { %v2476_v50 = vmax.f32 %v2473_v14, 0.0 }
 0x4f6   : > { %3185 = vmatmul.mubr.f32.vlgmr.msra.gmra.mrb[20].mxu1 %v2476_v50 }
 0x5c9   : > { %v2566_v42 = vpop.f32.mrb[20].mxu1 }
 0x5ca   : > { %v2567_v46 = vadd.f32 %v2753_v43, %v2566_v42  ;;  %v3186_v44 = vpop.f32.mrb[21].mxu1 }
 0x5cc   : > { %2570 = vst [vmem:[%s518_s18] sm:$0xff] %v2567_v46 }
 0x5cd   : > { %3631 = shalt.err (!%p3628_p7)
}
 0x5ce   : > { %s3632_s12 = scalar_lea.hbm %s4902_s30, 128  ;;  %s3636_s17 = scalar_lea.hbm %s5009_s1, 384 }
 0x5cf   : > { %p3633_p9 = scmp.ne.s32.totalorder %s4902_s30, %s3632_s12  ;;  %p3637_p3 = scmp.lt.u32.totalorder %s4902_s30, %s5009_s1 }
 0x5d0   : > { %p3638_p4 = scmp.lt.u32.totalorder %s3636_s17, %s3632_s12  ;;  %p3640_p5 = scmp.lt.u32.totalorder %s3632_s12, %s4902_s30 }
 0x5d1   : > { %p3634_p10 = pnand %p3633_p9, %p5010_p8 }
 0x5d2   : > { %p3639_p6 = por %p3638_p4, %p3637_p3 }
 0x5d3   : > { %p3635_p11 = pneg %p3634_p10 }
 0x5d4   : > { %p3641_p12 = por %p3640_p5, %p3639_p6 }
 0x5d6   : > { %p3642_p1 = pnand %p3641_p12, %p3635_p11 }
 0x5d8   : > { %3645 = shalt.err (!%p3642_p1)
}
 0x5d9   : > { %3333 = dma.vmem_to_hbm [thread:$0]  (%p5010_p8), %s4904_s7, 128, %s4902_s30, %s2572_s26  }
 0x5da PF: > { %p3375_p13 = scmp.ge.s32.totalorder %s3696_s24, 2  ;;  %s2597_s15 = sand.u32 1, %s3684_s21  }
 0x5db   : > { %p5011_p0 = scmp.ne.s32.totalorder %s4976_s14, 0  ;;  %s2598_s19 = scalar_lea.sflag [#allocation4], %s2597_s15 }
 0x5dd   : > { %p3359_p2 = pnand %p3375_p13, %p5011_p0 }
 0x5df   : > { %3679 = dma.done.wait (!%p3359_p2), %s2598_s19, 128  }
 0x5e0   : > { %3681 = vsyncadd (!%p3359_p2), %s2598_s19, 4294967168  ;;  %p28_p7 = scmp.ge.s32.totalorder %s3970_s25, 5   ;;  %s5012_s21 = smov %s3688_s22 }
 0x5e1   : > { %s5013_s22 = smov %s3692_s23  ;;  %s5014_s23 = smov %s3981_s9 }
 0x5e2   : > { %s5015_s24 = smov %s3970_s25  ;;  %30 = sbr.rel (!%p28_p7) target bundleno = 14 (0xe), region = 137 }
 0x5e9   :  { %2603 = vsyncpa [#allocation3], 1 }
 0x5ea   :  { %2605 = vsyncpa [#allocation3 + $0x1], 1 }
 0x5eb   :  { %2606 = vsyncpa [#allocation6], 1 }
 0x5ec   :  { %2607 = vsyncpa [#allocation9], 1 }
 0x5ed   :  { %2608 = vsyncpa [#allocation12], 1 }
 0x5ee   :  { %2609 = vsyncpa [#allocation4], 1 }
 0x5ef   :  { %2611 = vsyncpa [#allocation4 + $0x1], 1 }

</bundles_post_ra>
